<compile_context>
chip_gen: v5e
topology: v5e:2x2
jax: 0.10.0
libtpu: 0.0.40
codegen_flags: <defaults>
</compile_context>

<pallas_src>
import functools

import numpy as np

import jax
import jax.numpy as jnp
from jax.experimental import pallas as pl
from jax.experimental.pallas import tpu as pltpu


def _round_up(x, m):
    return (x + m - 1) // m * m


# ----------------------------- Pallas kernel ------------------------------ #
def _critic_kernel(x_ref, t1_ref, b1_ref, t2_ref, b2_ref, t3_ref, b3_ref,
                   o_ref, *, slope):
    """Whole critic for one batch tile: 3x (MXU matmul + bias [+ LeakyReLU])."""
    # Layer 1: conv(nc, d, 4, 2, 1) + LeakyReLU, as a dense matmul on the
    # NHWC-flattened image.  bf16 operands, f32 accumulation.
    h = jnp.dot(x_ref[...], t1_ref[...], preferred_element_type=jnp.float32)
    h = h + b1_ref[...]
    h = jnp.maximum(h, slope * h)                 # LeakyReLU: one VPU op

    # Layer 2: conv(d, 2d, 4, 2, 1) + LeakyReLU.  Intermediate stays in VMEM.
    h = jnp.dot(h.astype(t2_ref.dtype), t2_ref[...],
                preferred_element_type=jnp.float32)
    h = h + b2_ref[...]
    h = jnp.maximum(h, slope * h)

    # Layer 3 head: conv(2d, 1, 4, 1, 0), Cout padded to 128 lanes so the only
    # HBM store of the kernel is an unmasked lane-dense vst.
    h = jnp.dot(h.astype(t3_ref.dtype), t3_ref[...],
                preferred_element_type=jnp.float32)
    o_ref[...] = (h + b3_ref[...]).astype(o_ref.dtype)


def _critic_fused(x_rows, t1, b1, t2, b2, t3, b3, slope=0.2):
    """Fused 3-layer critic.  x_rows: (N, K1) NHWC-flattened images."""
    n, k1 = x_rows.shape
    h1 = t1.shape[1]
    h2 = t2.shape[1]
    h3 = t3.shape[1]                    # 128 (padded head)

    # Batch tile: big enough to amortize the ~0.35us per-step overhead; for
    # large N the grid has multiple "parallel" steps so both v7x TensorCores
    # get work; tiny N collapses to a single full-batch step.
    tn = min(1024, _round_up(n, 8))
    n_pad = _round_up(n, tn)
    x_p = x_rows.astype(jnp.bfloat16)
    if n_pad != n:
        # Small (< one tile) batch-row pad; padded rows produce bias-only
        # garbage that the caller slices off.
        x_p = jnp.pad(x_p, ((0, n_pad - n), (0, 0)))

    kernel = functools.partial(_critic_kernel, slope=slope)

    mm_elems = k1 * h1 + h1 * h2 + h2 * h3
    cost = pl.CostEstimate(
        flops=2 * n_pad * mm_elems,
        transcendentals=0,
        bytes_accessed=(n_pad * k1 * 2 + mm_elems * 2
                        + (h1 + h2 + h3) * 4 + n_pad * h3 * 4),
    )

    # TODO(synk): for large d the resident layer matrices (t1 is (H*W*nc, 64d))
    # outgrow VMEM; in that regime fall back to a K/Cout-tiled per-layer
    # pipeline instead of fully VMEM-resident layer matrices.
    out = pl.pallas_call(
        kernel,
        out_shape=jax.ShapeDtypeStruct((n_pad, h3), jnp.float32),
        grid=(n_pad // tn,),
        in_specs=[
            pl.BlockSpec((tn, k1), lambda i: (i, 0)),   # images: streamed per tile
            pl.BlockSpec((k1, h1), lambda i: (0, 0)),   # layer matrices + biases:
            pl.BlockSpec((1, h1), lambda i: (0, 0)),    #   VMEM-resident across grid
            pl.BlockSpec((h1, h2), lambda i: (0, 0)),
            pl.BlockSpec((1, h2), lambda i: (0, 0)),
            pl.BlockSpec((h2, h3), lambda i: (0, 0)),
            pl.BlockSpec((1, h3), lambda i: (0, 0)),
        ],
        out_specs=pl.BlockSpec((tn, h3), lambda i: (i, 0)),
        compiler_params=pltpu.CompilerParams(
            dimension_semantics=("parallel",),   # megacore-shardable batch axis
            vmem_limit_bytes=48 * 1024 * 1024,   # <= 48 MiB: fits v7x's 64 MiB
        ),
        cost_estimate=cost,
    )(x_p,
      t1.astype(jnp.bfloat16), b1.astype(jnp.float32),
      t2.astype(jnp.bfloat16), b2.astype(jnp.float32),
      t3.astype(jnp.bfloat16), b3.astype(jnp.float32))
    return out


# ------------------------------- JAX glue ---------------------------------- #
def _conv_as_dense(w_oihw, h, w, stride, pad):
    """Fold one conv layer into a dense matrix over the NHWC-flattened input.

    Returns (T, oh, ow) with T of shape (h*w*Cin, oh*ow*Cout) such that
    flat_out = flat_in @ T reproduces the conv exactly (flattening index is
    (y*W + x)*C + c).  The 0/1 selection tensor is a compile-time constant and
    each T entry is a single copied weight (taps never overlap for a fixed
    (out-pixel, in-pixel) pair), so no im2col patches ever hit HBM.
    """
    cout, cin, kh, kw = map(int, w_oihw.shape)
    oh = (h + 2 * pad - kh) // stride + 1
    ow = (w + 2 * pad - kw) // stride + 1
    sel = np.zeros((oh * ow, kh, kw, h * w), np.float32)
    for oy in range(oh):
        for ox in range(ow):
            p = oy * ow + ox
            for i in range(kh):
                y = oy * stride + i - pad
                if y < 0 or y >= h:
                    continue
                for j in range(kw):
                    x = ox * stride + j - pad
                    if x < 0 or x >= w:
                        continue
                    sel[p, i, j, y * w + x] = 1.0
    t = jnp.einsum("pijq,ocij->qcpo", sel, w_oihw)
    return t.reshape(h * w * cin, oh * ow * cout), oh, ow


def init_params(key, d, nc):
    # TODO(synk): self.net is None in the reference __init__; we instantiate the
    # canonical WGAN/DCGAN critic its forward implies:
    #   Conv(nc, d, 4, 2, 1) + LeakyReLU(0.2)
    #   Conv(d, 2d, 4, 2, 1) + LeakyReLU(0.2)
    #   Conv(2d, 1, 4, 1, 0)  -> (N,1,1,1) -> view(-1,1).squeeze(1) -> (N,)
    ks = jax.random.split(key, 3)
    w1 = 0.02 * jax.random.normal(ks[0], (d, nc, 4, 4), jnp.float32)
    b1 = jnp.zeros((d,), jnp.float32)
    w2 = 0.02 * jax.random.normal(ks[1], (2 * d, d, 4, 4), jnp.float32)
    b2 = jnp.zeros((2 * d,), jnp.float32)
    w3 = 0.02 * jax.random.normal(ks[2], (1, 2 * d, 4, 4), jnp.float32)
    b3 = jnp.zeros((1,), jnp.float32)
    return dict(w1=w1, b1=b1, w2=w2, b2=b2, w3=w3, b3=b3)


def discriminator_forward(params, x_nchw):
    n, nc, h, w = x_nchw.shape

    # Fold each conv into its dense NHWC-flattened matrix (weights-only work,
    # a few-microsecond XLA einsum per layer; independent of batch size).
    t1, oh1, ow1 = _conv_as_dense(params["w1"], h, w, stride=2, pad=1)
    t2, oh2, ow2 = _conv_as_dense(params["w2"], oh1, ow1, stride=2, pad=1)
    t3, oh3, ow3 = _conv_as_dense(params["w3"], oh2, ow2, stride=1, pad=0)
    assert oh3 == 1 and ow3 == 1, (
        "final conv must reduce spatial size to 1x1, got %dx%d" % (oh3, ow3))

    # Biases broadcast to the flattened (out-pixel, channel) layout.
    b1r = jnp.tile(params["b1"], oh1 * ow1).reshape(1, -1)
    b2r = jnp.tile(params["b2"], oh2 * ow2).reshape(1, -1)
    # Head: pad Cout 1 -> 128 so the kernel's only HBM store is lane-dense.
    t3p = jnp.pad(t3, ((0, 0), (0, 128 - t3.shape[1])))
    b3r = jnp.pad(params["b3"].reshape(1, 1), ((0, 0), (0, 127)))

    # NCHW -> flattened NHWC rows (one small pass over the tiny input).
    x_rows = jnp.transpose(x_nchw, (0, 2, 3, 1)).reshape(n, h * w * nc)

    out = _critic_fused(x_rows, t1, b1r, t2, b2r, t3p, b3r)
    # .view(-1, 1).squeeze(1)
    return out[:n, 0]


def _reference_forward(params, x):
    """Plain-XLA f32 conv reference for correctness checking."""
    def conv(x, w, b, stride, pad):
        y = jax.lax.conv_general_dilated(
            x, w, window_strides=(stride, stride),
            padding=[(pad, pad), (pad, pad)],
            dimension_numbers=("NCHW", "OIHW", "NCHW"))
        return y + b.reshape(1, -1, 1, 1)

    def lrelu(v):
        return jnp.where(v > 0, v, 0.2 * v)

    h = lrelu(conv(x, params["w1"], params["b1"], 2, 1))
    h = lrelu(conv(h, params["w2"], params["b2"], 2, 1))
    h = conv(h, params["w3"], params["b3"], 1, 0)
    return h.reshape(-1, 1).squeeze(1)


if __name__ == "__main__":
    key = jax.random.PRNGKey(0)
    k_param, k_x = jax.random.split(key)

    batch, nc, spatial, d = 2, 4, 16, 8
    params = init_params(k_param, d=d, nc=nc)
    x = jax.random.normal(k_x, (batch, nc, spatial, spatial), jnp.float32)

    fwd = jax.jit(discriminator_forward)
    out = fwd(params, x)
    jax.block_until_ready(out)
    assert out.shape == (batch,), out.shape

    # Sanity check vs. f32 XLA conv reference (kernel uses bf16 MXU operands,
    # so tolerances are intentionally loose).
    ref = _reference_forward(params, x)
    if not bool(jnp.allclose(out, ref, rtol=0.25, atol=3e-4)):
        raise AssertionError(f"mismatch: pallas={out} ref={ref}")
    print("KERNEL_OK")
</pallas_src>

<mosaic_0001>
module attributes {stable_mosaic.version = 11 : i64} {
  func.func @_critic_kernel(%arg0: i32, %arg1: memref<8x1024xbf16, #tpu.memory_space<vmem>>, %arg2: memref<1024x512xbf16, #tpu.memory_space<vmem>>, %arg3: memref<1x512xf32, #tpu.memory_space<vmem>>, %arg4: memref<512x256xbf16, #tpu.memory_space<vmem>>, %arg5: memref<1x256xf32, #tpu.memory_space<vmem>>, %arg6: memref<256x128xbf16, #tpu.memory_space<vmem>>, %arg7: memref<1x128xf32, #tpu.memory_space<vmem>>, %arg8: memref<8x128xf32, #tpu.memory_space<vmem>>) attributes {dimension_semantics = [#tpu.dimension_semantics<parallel>], iteration_bounds = array<i64: 1>, scalar_prefetch = 0 : i64, scratch_operands = 0 : i64, tpu.core_type = #tpu.core_type<tc>, window_params = [{transform_indices = @transform_0, window_bounds = array<i64: 8, 1024>}, {pipeline_mode = #tpu.pipeline_mode<synchronous>, transform_indices = @transform_1, window_bounds = array<i64: 1024, 512>}, {pipeline_mode = #tpu.pipeline_mode<synchronous>, transform_indices = @transform_2, window_bounds = array<i64: 1, 512>}, {pipeline_mode = #tpu.pipeline_mode<synchronous>, transform_indices = @transform_3, window_bounds = array<i64: 512, 256>}, {pipeline_mode = #tpu.pipeline_mode<synchronous>, transform_indices = @transform_4, window_bounds = array<i64: 1, 256>}, {pipeline_mode = #tpu.pipeline_mode<synchronous>, transform_indices = @transform_5, window_bounds = array<i64: 256, 128>}, {pipeline_mode = #tpu.pipeline_mode<synchronous>, transform_indices = @transform_6, window_bounds = array<i64: 1, 128>}, {transform_indices = @transform_7, window_bounds = array<i64: 8, 128>}]} {
    %c0 = arith.constant 0 : index
    %c0_0 = arith.constant 0 : index
    %0 = vector.load %arg1[%c0, %c0_0] : memref<8x1024xbf16, #tpu.memory_space<vmem>>, vector<8x1024xbf16>
    %c0_1 = arith.constant 0 : index
    %c0_2 = arith.constant 0 : index
    %1 = vector.load %arg2[%c0_1, %c0_2] : memref<1024x512xbf16, #tpu.memory_space<vmem>>, vector<1024x512xbf16>
    %cst = arith.constant dense<0.000000e+00> : vector<8x512xf32>
    %2 = tpu.matmul %0, %1, %cst {dimension_numbers = #tpu.dot_dimension_numbers<[1], [0], [0], [1], [0, 0, 1, 1], [], []>} : vector<8x1024xbf16>, vector<1024x512xbf16>, vector<8x512xf32> -> vector<8x512xf32>
    %c0_3 = arith.constant 0 : index
    %c0_4 = arith.constant 0 : index
    %3 = vector.load %arg3[%c0_3, %c0_4] : memref<1x512xf32, #tpu.memory_space<vmem>>, vector<1x512xf32>
    %4 = vector.broadcast %3 : vector<1x512xf32> to vector<8x512xf32>
    %5 = arith.addf %2, %4 : vector<8x512xf32>
    %cst_5 = arith.constant 2.000000e-01 : f32
    %6 = vector.broadcast %cst_5 : f32 to vector<8x512xf32>
    %7 = arith.mulf %6, %5 : vector<8x512xf32>
    %8 = arith.maximumf %5, %7 : vector<8x512xf32>
    %9 = arith.truncf %8 : vector<8x512xf32> to vector<8x512xbf16>
    %c0_6 = arith.constant 0 : index
    %c0_7 = arith.constant 0 : index
    %10 = vector.load %arg4[%c0_6, %c0_7] : memref<512x256xbf16, #tpu.memory_space<vmem>>, vector<512x256xbf16>
    %cst_8 = arith.constant dense<0.000000e+00> : vector<8x256xf32>
    %11 = tpu.matmul %9, %10, %cst_8 {dimension_numbers = #tpu.dot_dimension_numbers<[1], [0], [0], [1], [0, 0, 1, 1], [], []>} : vector<8x512xbf16>, vector<512x256xbf16>, vector<8x256xf32> -> vector<8x256xf32>
    %c0_9 = arith.constant 0 : index
    %c0_10 = arith.constant 0 : index
    %12 = vector.load %arg5[%c0_9, %c0_10] : memref<1x256xf32, #tpu.memory_space<vmem>>, vector<1x256xf32>
    %13 = vector.broadcast %12 : vector<1x256xf32> to vector<8x256xf32>
    %14 = arith.addf %11, %13 : vector<8x256xf32>
    %cst_11 = arith.constant 2.000000e-01 : f32
    %15 = vector.broadcast %cst_11 : f32 to vector<8x256xf32>
    %16 = arith.mulf %15, %14 : vector<8x256xf32>
    %17 = arith.maximumf %14, %16 : vector<8x256xf32>
    %18 = arith.truncf %17 : vector<8x256xf32> to vector<8x256xbf16>
    %c0_12 = arith.constant 0 : index
    %c0_13 = arith.constant 0 : index
    %19 = vector.load %arg6[%c0_12, %c0_13] : memref<256x128xbf16, #tpu.memory_space<vmem>>, vector<256x128xbf16>
    %cst_14 = arith.constant dense<0.000000e+00> : vector<8x128xf32>
    %20 = tpu.matmul %18, %19, %cst_14 {dimension_numbers = #tpu.dot_dimension_numbers<[1], [0], [0], [1], [0, 0, 1, 1], [], []>} : vector<8x256xbf16>, vector<256x128xbf16>, vector<8x128xf32> -> vector<8x128xf32>
    %c0_15 = arith.constant 0 : index
    %c0_16 = arith.constant 0 : index
    %21 = vector.load %arg7[%c0_15, %c0_16] : memref<1x128xf32, #tpu.memory_space<vmem>>, vector<1x128xf32>
    %22 = vector.broadcast %21 : vector<1x128xf32> to vector<8x128xf32>
    %23 = arith.addf %20, %22 : vector<8x128xf32>
    %c0_17 = arith.constant 0 : index
    %c0_18 = arith.constant 0 : index
    %24 = vector.load %arg8[%c0_17, %c0_18] : memref<8x128xf32, #tpu.memory_space<vmem>>, vector<8x128xf32>
    tpu.vector_store %arg8[%c0_17, %c0_18], %23 {strides = array<i32>} : memref<8x128xf32, #tpu.memory_space<vmem>>, vector<8x128xf32>,
    return
  }
  func.func @transform_0(%arg0: i32) -> (i32, i32) {
    %c0_i32 = arith.constant 0 : i32
    %c0_i32_0 = arith.constant 0 : i32
    return %arg0, %c0_i32 : i32, i32
  }
  func.func @transform_1(%arg0: i32) -> (i32, i32) {
    %c0_i32 = arith.constant 0 : i32
    %c0_i32_0 = arith.constant 0 : i32
    %c0_i32_1 = arith.constant 0 : i32
    return %c0_i32, %c0_i32_0 : i32, i32
  }
  func.func @transform_2(%arg0: i32) -> (i32, i32) {
    %c0_i32 = arith.constant 0 : i32
    %c0_i32_0 = arith.constant 0 : i32
    %c0_i32_1 = arith.constant 0 : i32
    return %c0_i32, %c0_i32_0 : i32, i32
  }
  func.func @transform_3(%arg0: i32) -> (i32, i32) {
    %c0_i32 = arith.constant 0 : i32
    %c0_i32_0 = arith.constant 0 : i32
    %c0_i32_1 = arith.constant 0 : i32
    return %c0_i32, %c0_i32_0 : i32, i32
  }
  func.func @transform_4(%arg0: i32) -> (i32, i32) {
    %c0_i32 = arith.constant 0 : i32
    %c0_i32_0 = arith.constant 0 : i32
    %c0_i32_1 = arith.constant 0 : i32
    return %c0_i32, %c0_i32_0 : i32, i32
  }
  func.func @transform_5(%arg0: i32) -> (i32, i32) {
    %c0_i32 = arith.constant 0 : i32
    %c0_i32_0 = arith.constant 0 : i32
    %c0_i32_1 = arith.constant 0 : i32
    return %c0_i32, %c0_i32_0 : i32, i32
  }
  func.func @transform_6(%arg0: i32) -> (i32, i32) {
    %c0_i32 = arith.constant 0 : i32
    %c0_i32_0 = arith.constant 0 : i32
    %c0_i32_1 = arith.constant 0 : i32
    return %c0_i32, %c0_i32_0 : i32, i32
  }
  func.func @transform_7(%arg0: i32) -> (i32, i32) {
    %c0_i32 = arith.constant 0 : i32
    %c0_i32_0 = arith.constant 0 : i32
    return %arg0, %c0_i32 : i32, i32
  }
}

</mosaic_0001>

<bundles_post_ra>
// kernel: tile.13
= control target key start
LH: loop header
LB: loop body
LE: loop exit
PB: predicated region body
PF: predicated region fallthrough
CT: control target
= control target key end

     0   :  { %s64_s0 = inlined_call_operand.vmem [shape: f32[8], index: 0, kind: input, shape index: {}]   ;;  %s65_s1 = inlined_call_operand.vmem [shape: f32[64,8], index: 1, kind: output, shape index: {}]  }
   0x1   :  { %v4_v0 = vld [vmem:[%s64_s0] ss:$0 sm:$0xff] }
   0x2   :  { %5 = vst [vmem:[%s65_s1] sm:$0xff] %v4_v0 }
   0x3   :  { %20 = vst [vmem:[%s65_s1 + $0x8] sm:$0xff] %v4_v0 }
   0x4   :  { %21 = vst [vmem:[%s65_s1 + $0x10] sm:$0xff] %v4_v0 }
   0x5   :  { %22 = vst [vmem:[%s65_s1 + $0x18] sm:$0xff] %v4_v0 }
   0x6   :  { %23 = vst [vmem:[%s65_s1 + $0x20] sm:$0xff] %v4_v0 }
   0x7   :  { %24 = vst [vmem:[%s65_s1 + $0x28] sm:$0xff] %v4_v0 }
   0x8   :  { %25 = vst [vmem:[%s65_s1 + $0x30] sm:$0xff] %v4_v0 }
   0x9   :  { %26 = vst [vmem:[%s65_s1 + $0x38] sm:$0xff] %v4_v0 }

// kernel: tile.14
= control target key start
LH: loop header
LB: loop body
LE: loop exit
PB: predicated region body
PF: predicated region fallthrough
CT: control target
= control target key end

     0   :  { %vm6_vm0 = vcmask 1043458   ;;  %s11_s6 = smov 3  ;;  %s14_s7 = smov 12  ;;  %vm8_vm1 = vcmask 64512   ;;  %vm20_vm2 = vcmask 1048512   ;;  %vm32_vm3 = vcmask 982912   ;;  %s411_s0 = inlined_call_operand.vmem [shape: f32[64,8], index: 0, kind: input, shape index: {}]   ;;  %s412_s1 = inlined_call_operand.vmem [shape: f32[1,512], index: 1, kind: output, shape index: {}]  }
   0x1   :  { %v214_v0 = vld [vmem:[%s411_s0 + $0xf] ss:$16 sm:%s11_s6]   ;;  %s35_s12 = smov 3  ;;  %s38_s15 = smov 12  ;;  %vm44_vm4 = vcmask 917312   ;;  %vm56_vm5 = vcmask 851712  }
   0x2   :  { %v215_v1 = vld [vmem:[%s411_s0 + $0xf] ss:$16 sm:%s14_s7]   ;;  %v218_v3 = vld [vmem:[%s411_s0 + $0xd] ss:$16 sm:%s35_s12]   ;;  %s262_s16 = smov 120   ;;  %s23_s19 = smov 3 }
   0x3   :  { %v17_v2 = vsel %vm6_vm0, %v215_v1, %v214_v0  ;;  %v219_v4 = vld [vmem:[%s411_s0 + $0xd] ss:$16 sm:%s38_s15]   ;;  %s26_s20 = smov 12  ;;  %v216_v6 = vld [vmem:[%s411_s0 + $0xe] ss:$16 sm:%s23_s19]   ;;  %s47_s23 = smov 3 }
   0x4   :  { %18 = vrot.lane.b32.xlu0 %v17_v2, %s262_s16  ;;  %v41_v5 = vsel %vm6_vm0, %v219_v4, %v218_v3  ;;  %s263_s24 = smov 104   ;;  %v217_v7 = vld [vmem:[%s411_s0 + $0xe] ss:$16 sm:%s26_s20]   ;;  %s50_s27 = smov 12  ;;  %vm68_vm6 = vcmask 786112   ;;  %vm80_vm7 = vcmask 720512  }
   0x5   :  { %42 = vrot.lane.b32.xlu1 %v41_v5, %s263_s24  ;;  %v220_v8 = vld [vmem:[%s411_s0 + $0xc] ss:$16 sm:%s47_s23]   ;;  %v29_v10 = vsel %vm6_vm0, %v217_v7, %v216_v6  ;;  %s83_s3 = smov 3  ;;  %s86_s4 = smov 12  ;;  %vm92_vm8 = vcmask 654912   ;;  %vm104_vm9 = vcmask 589312  }
   0x6   :  { %v221_v9 = vld [vmem:[%s411_s0 + $0xc] ss:$16 sm:%s50_s27]   ;;  %s264_s5 = smov 112   ;;  %s95_s6 = smov 3  ;;  %v226_v12 = vld [vmem:[%s411_s0 + $0x9] ss:$16 sm:%s83_s3]  }
   0x7   :  { %v53_v11 = vsel %vm6_vm0, %v221_v9, %v220_v8  ;;  %s98_s7 = smov 12  ;;  %v227_v13 = vld [vmem:[%s411_s0 + $0x9] ss:$16 sm:%s86_s4]   ;;  %s59_s12 = smov 3  ;;  %v228_v16 = vld [vmem:[%s411_s0 + $0x8] ss:$16 sm:%s95_s6]  }
   0x8   :  { %s62_s13 = smov 12  ;;  %s265_s14 = smov 96   ;;  %v222_v14 = vld [vmem:[%s411_s0 + $0xb] ss:$16 sm:%s59_s12]   ;;  %v229_v17 = vld [vmem:[%s411_s0 + $0x8] ss:$16 sm:%s98_s7]   ;;  %v89_v19 = vsel %vm6_vm0, %v227_v13, %v226_v12 }
   0x9   :  { %v223_v15 = vld [vmem:[%s411_s0 + $0xb] ss:$16 sm:%s62_s13]   ;;  %s266_s23 = smov 88   ;;  %s71_s24 = smov 3  ;;  %v101_v20 = vsel %vm6_vm0, %v229_v17, %v228_v16  ;;  %vm116_vm10 = vcmask 523712   ;;  %vm128_vm11 = vcmask 458112  }
   0xa   :  { %v65_v18 = vsel %vm6_vm0, %v223_v15, %v222_v14  ;;  %s119_s25 = smov 3  ;;  %s74_s26 = smov 12  ;;  %v224_v21 = vld [vmem:[%s411_s0 + $0xa] ss:$16 sm:%s71_s24]   ;;  %vm140_vm12 = vcmask 392512   ;;  %vm152_vm13 = vcmask 326912  }
   0xb   :  { %66 = vrot.lane.b32.xlu2 %v65_v18, %s266_s23  ;;  %s122_s27 = smov 12  ;;  %v225_v22 = vld [vmem:[%s411_s0 + $0xa] ss:$16 sm:%s74_s26]   ;;  %s267_s3 = smov 72   ;;  %vm164_vm14 = vcmask 261312   ;;  %vm176_vm15 = vcmask 195712  }
   0xc   :  { %30 = vrot.lane.b32.xlu0 %v29_v10, %s264_s5  ;;  %v232_v23 = vld [vmem:[%s411_s0 + $0x6] ss:$16 sm:%s119_s25]   ;;  %s131_s6 = smov 3  ;;  %s134_s7 = smov 12  ;;  %v77_v25 = vsel %vm6_vm0, %v225_v22, %v224_v21 }
   0xd   :  { %54 = vrot.lane.b32.xlu1 %v53_v11, %s265_s14  ;;  %s268_s8 = smov 64   ;;  %v233_v24 = vld [vmem:[%s411_s0 + $0x6] ss:$16 sm:%s122_s27]   ;;  %s107_s15 = smov 3 }
   0xe   :  { %v234_v26 = vld [vmem:[%s411_s0 + $0x5] ss:$16 sm:%s131_s6]   ;;  %s110_s16 = smov 12  ;;  %v125_v28 = vsel %vm6_vm0, %v233_v24, %v232_v23  ;;  %s269_s17 = smov 80   ;;  %v230_v30 = vld [vmem:[%s411_s0 + $0x7] ss:$16 sm:%s107_s15]  }
   0xf   :  { %v235_v27 = vld [vmem:[%s411_s0 + $0x5] ss:$16 sm:%s134_s7]   ;;  %s155_s18 = smov 3  ;;  %s158_s19 = smov 12  ;;  %v231_v31 = vld [vmem:[%s411_s0 + $0x7] ss:$16 sm:%s110_s16]  }
  0x10   :  { %v137_v29 = vsel %vm6_vm0, %v235_v27, %v234_v26  ;;  %s270_s24 = smov 48   ;;  %v238_v32 = vld [vmem:[%s411_s0 + $0x3] ss:$16 sm:%s155_s18]   ;;  %s167_s27 = smov 3  ;;  %v113_v34 = vsel %vm6_vm0, %v231_v31, %v230_v30 }
  0x11   :  { %s170_s28 = smov 12  ;;  %s271_s29 = smov 40   ;;  %v239_v33 = vld [vmem:[%s411_s0 + $0x3] ss:$16 sm:%s158_s19]   ;;  %v240_v35 = vld [vmem:[%s411_s0 + $0x2] ss:$16 sm:%s167_s27]  }
  0x12   :  { %v241_v36 = vld [vmem:[%s411_s0 + $0x2] ss:$16 sm:%s170_s28]   ;;  %s143_s7 = smov 3  ;;  %v161_v37 = vsel %vm6_vm0, %v239_v33, %v238_v32  ;;  %s272_s9 = smov 56  }
  0x13   :  { %78 = vrot.lane.b32.xlu2 %v77_v25, %s269_s17  ;;  %v173_v38 = vsel %vm6_vm0, %v241_v36, %v240_v35  ;;  %v236_v39 = vld [vmem:[%s411_s0 + $0x4] ss:$16 sm:%s143_s7]   ;;  %s273_s14 = smov 24   ;;  %s274_s15 = smov 16  }
  0x14   :  { %90 = vrot.lane.b32.xlu0 %v89_v19, %s267_s3  ;;  %s179_s16 = smov 3  ;;  %s182_s17 = smov 12 }
  0x15   :  { %102 = vrot.lane.b32.xlu1 %v101_v20, %s268_s8  ;;  %s146_s8 = smov 12  ;;  %s275_s18 = smov 32   ;;  %v242_v42 = vld [vmem:[%s411_s0 + $0x1] ss:$16 sm:%s179_s16]  }
  0x16   :  { %v237_v40 = vld [vmem:[%s411_s0 + $0x4] ss:$16 sm:%s146_s8]   ;;  %v243_v43 = vld [vmem:[%s411_s0 + $0x1] ss:$16 sm:%s182_s17]   ;;  %s276_s23 = smov 8   ;;  %s4_s25 = smov 12 }
  0x17   :  { %v149_v41 = vsel %vm6_vm0, %v237_v40, %v236_v39  ;;  %v185_v44 = vsel %vm6_vm0, %v243_v43, %v242_v42  ;;  %v5_v46 = vld [vmem:[%s411_s0] ss:$16 sm:%s4_s25]  }
  0x1b   :  { %114 = vrot.lane.b32.xlu2 %v113_v34, %s272_s9 }
  0x1c   :  { %126 = vrot.lane.b32.xlu0 %v125_v28, %s270_s24  ;;  %s2_s24 = smov 3 }
  0x1d   :  { %138 = vrot.lane.b32.xlu1 %v137_v29, %s271_s29  ;;  %v3_v45 = vld [vmem:[%s411_s0] ss:$16 sm:%s2_s24]  }
  0x1e   :  { %v7_v47 = vsel %vm6_vm0, %v5_v46, %v3_v45  ;;  %vm188_vm0 = vcmask 130112  }
  0x1f   :  { %9 = vst.msk [vmem:[#allocation0] ss:$8 sm:$0xf] %vm8_vm1, %v7_v47  }
  0x23   :  { %150 = vrot.lane.b32.xlu2 %v149_v41, %s275_s18 }
  0x24   :  { %162 = vrot.lane.b32.xlu0 %v161_v37, %s273_s14 }
  0x25   :  { %174 = vrot.lane.b32.xlu1 %v173_v38, %s274_s15 }
  0x2b   :  { %186 = vrot.lane.b32.xlu2 %v185_v44, %s276_s23 }
  0x65   :  { %v67_v48 = vpop.permute.xlu2 %66  }
  0x6d   :  { %v79_v49 = vpop.permute.xlu2 %78  }
  0x75   :  { %v115_v52 = vpop.permute.xlu2 %114  }
  0x76   :  { %v19_v50 = vpop.permute.xlu0 %18  }
  0x77   :  { %21 = vst.msk [vmem:[#allocation0] ss:$8 sm:$0xf] %vm20_vm2, %v19_v50   ;;  %v43_v51 = vpop.permute.xlu1 %42  }
  0x7d   :  { %v151_v55 = vpop.permute.xlu2 %150  }
  0x7e   :  { %v31_v53 = vpop.permute.xlu0 %30  }
  0x7f   :  { %33 = vst.msk [vmem:[#allocation0] ss:$8 sm:$0xf] %vm32_vm3, %v31_v53   ;;  %v55_v54 = vpop.permute.xlu1 %54  }
  0x80   :  { %45 = vst.msk [vmem:[#allocation0] ss:$8 sm:$0xf] %vm44_vm4, %v43_v51  }
  0x81   :  { %57 = vst.msk [vmem:[#allocation0] ss:$8 sm:$0xf] %vm56_vm5, %v55_v54  }
  0x82   :  { %69 = vst.msk [vmem:[#allocation0] ss:$8 sm:$0xf] %vm68_vm6, %v67_v48  }
  0x83   :  { %81 = vst.msk [vmem:[#allocation0] ss:$8 sm:$0xf] %vm80_vm7, %v79_v49  }
  0x85   :  { %v187_v58 = vpop.permute.xlu2 %186  }
  0x86   :  { %v91_v56 = vpop.permute.xlu0 %90  }
  0x87   :  { %93 = vst.msk [vmem:[#allocation0] ss:$8 sm:$0xf] %vm92_vm8, %v91_v56   ;;  %v103_v57 = vpop.permute.xlu1 %102  }
  0x88   :  { %105 = vst.msk [vmem:[#allocation0] ss:$8 sm:$0xf] %vm104_vm9, %v103_v57  }
  0x89   :  { %117 = vst.msk [vmem:[#allocation0] ss:$8 sm:$0xf] %vm116_vm10, %v115_v52  }
  0x8e   :  { %v127_v59 = vpop.permute.xlu0 %126  }
  0x8f   :  { %129 = vst.msk [vmem:[#allocation0] ss:$8 sm:$0xf] %vm128_vm11, %v127_v59   ;;  %v139_v60 = vpop.permute.xlu1 %138  }
  0x90   :  { %141 = vst.msk [vmem:[#allocation0] ss:$8 sm:$0xf] %vm140_vm12, %v139_v60  }
  0x91   :  { %153 = vst.msk [vmem:[#allocation0] ss:$8 sm:$0xf] %vm152_vm13, %v151_v55  }
  0x96   :  { %v163_v61 = vpop.permute.xlu0 %162  }
  0x97   :  { %165 = vst.msk [vmem:[#allocation0] ss:$8 sm:$0xf] %vm164_vm14, %v163_v61   ;;  %v175_v62 = vpop.permute.xlu1 %174  }
  0x98   :  { %177 = vst.msk [vmem:[#allocation0] ss:$8 sm:$0xf] %vm176_vm15, %v175_v62  }
  0x99   :  { %189 = vst.msk [vmem:[#allocation0] ss:$8 sm:$0xf] %vm188_vm0, %v187_v58  }
  0xa0   :  { %v192_v63 = vld [vmem:[#allocation0] sm:$0x1]  ;;  %v197_v0 = vld [vmem:[#allocation0 + $0x8] sm:$0x1]  ;;  %v203_v1 = vld [vmem:[#allocation0 + $0x10] sm:$0x1] }
  0xa1   :  { %195 = vst [vmem:[%s412_s1] sm:$0x1] %v192_v63  ;;  %v209_v2 = vld [vmem:[#allocation0 + $0x18] sm:$0x1] }
  0xa2   :  { %244 = vst [vmem:[%s412_s1 + $0x1] sm:$0x1] %v197_v0 }
  0xa3   :  { %245 = vst [vmem:[%s412_s1 + $0x2] sm:$0x1] %v203_v1 }
  0xa4   :  { %246 = vst [vmem:[%s412_s1 + $0x3] sm:$0x1] %v209_v2 }

// kernel: tile.18
= control target key start
LH: loop header
LB: loop body
LE: loop exit
PB: predicated region body
PF: predicated region fallthrough
CT: control target
= control target key end

     0   :  { %s28_s0 = inlined_call_operand.vmem [shape: f32[16], index: 0, kind: input, shape index: {}]   ;;  %s29_s1 = inlined_call_operand.vmem [shape: f32[16,16], index: 1, kind: output, shape index: {}]  }
   0x1   :  { %v4_v0 = vld [vmem:[%s28_s0] ss:$0 sm:$0xff] }
   0x2   :  { %5 = vst [vmem:[%s29_s1] sm:$0xff] %v4_v0 }
   0x3   :  { %8 = vst [vmem:[%s29_s1 + $0x8] sm:$0xff] %v4_v0 }

// kernel: tile.19
= control target key start
LH: loop header
LB: loop body
LE: loop exit
PB: predicated region body
PF: predicated region fallthrough
CT: control target
= control target key end

     0   :  { %s7_s6 = smov 3  ;;  %s21_s9 = smov 3  ;;  %vm4_vm0 = vcmask 130048   ;;  %vm11_vm1 = vcmask 1048448   ;;  %vm18_vm2 = vcmask 917248   ;;  %vm25_vm3 = vcmask 786048   ;;  %s129_s0 = inlined_call_operand.vmem [shape: f32[16,16], index: 0, kind: input, shape index: {}]   ;;  %s130_s1 = inlined_call_operand.vmem [shape: f32[1,256], index: 1, kind: output, shape index: {}]  }
   0x1   :  { %v67_v0 = vld [vmem:[%s129_s0 + $0x7] ss:$8 sm:%s7_s6]   ;;  %s82_s10 = smov 112   ;;  %v69_v1 = vld [vmem:[%s129_s0 + $0x5] ss:$8 sm:%s21_s9]   ;;  %s83_s13 = smov 80  }
   0x2   :  { %9 = vrot.lane.b32.xlu0 %v67_v0, %s82_s10  ;;  %23 = vrot.lane.b32.xlu1 %v69_v1, %s83_s13  ;;  %s14_s14 = smov 3  ;;  %s28_s15 = smov 3  ;;  %vm32_vm4 = vcmask 654848   ;;  %vm39_vm5 = vcmask 523648   ;;  %vm46_vm6 = vcmask 392448   ;;  %vm53_vm7 = vcmask 261248  }
   0x3   :  { %s35_s16 = smov 3  ;;  %v68_v3 = vld [vmem:[%s129_s0 + $0x6] ss:$8 sm:%s14_s14]   ;;  %s84_s21 = smov 48   ;;  %v70_v4 = vld [vmem:[%s129_s0 + $0x4] ss:$8 sm:%s28_s15]  }
   0x4   :  { %v71_v2 = vld [vmem:[%s129_s0 + $0x3] ss:$8 sm:%s35_s16]   ;;  %s42_s24 = smov 3  ;;  %s85_s25 = smov 96  }
   0x5   :  { %37 = vrot.lane.b32.xlu2 %v71_v2, %s84_s21  ;;  %s86_s26 = smov 64   ;;  %s49_s27 = smov 3  ;;  %v72_v5 = vld [vmem:[%s129_s0 + $0x2] ss:$8 sm:%s42_s24]  }
   0x6   :  { %v73_v6 = vld [vmem:[%s129_s0 + $0x1] ss:$8 sm:%s49_s27]   ;;  %s87_s3 = smov 32   ;;  %s88_s4 = smov 16  }
   0x7   :  { %s2_s5 = smov 3 }
   0x8   :  { %v3_v7 = vld [vmem:[%s129_s0] ss:$8 sm:%s2_s5]  }
   0x9   :  { %5 = vst.msk [vmem:[#allocation0] ss:$8 sm:$0x3] %vm4_vm0, %v3_v7  }
   0xa   :  { %16 = vrot.lane.b32.xlu0 %v68_v3, %s85_s25  ;;  %30 = vrot.lane.b32.xlu1 %v70_v4, %s86_s26 }
   0xd   :  { %44 = vrot.lane.b32.xlu2 %v72_v5, %s87_s3 }
  0x12   :  { %51 = vrot.lane.b32.xlu0 %v73_v6, %s88_s4 }
  0x5f   :  { %v38_v8 = vpop.permute.xlu2 %37  }
  0x67   :  { %v45_v9 = vpop.permute.xlu2 %44  }
  0x74   :  { %v10_v10 = vpop.permute.xlu0 %9   ;;  %v24_v11 = vpop.permute.xlu1 %23  }
  0x75   :  { %12 = vst.msk [vmem:[#allocation0] ss:$8 sm:$0x3] %vm11_vm1, %v10_v10  }
  0x7c   :  { %v17_v12 = vpop.permute.xlu0 %16   ;;  %v31_v13 = vpop.permute.xlu1 %30  }
  0x7d   :  { %19 = vst.msk [vmem:[#allocation0] ss:$8 sm:$0x3] %vm18_vm2, %v17_v12  }
  0x7e   :  { %26 = vst.msk [vmem:[#allocation0] ss:$8 sm:$0x3] %vm25_vm3, %v24_v11  }
  0x7f   :  { %33 = vst.msk [vmem:[#allocation0] ss:$8 sm:$0x3] %vm32_vm4, %v31_v13  }
  0x80   :  { %40 = vst.msk [vmem:[#allocation0] ss:$8 sm:$0x3] %vm39_vm5, %v38_v8  }
  0x81   :  { %47 = vst.msk [vmem:[#allocation0] ss:$8 sm:$0x3] %vm46_vm6, %v45_v9  }
  0x84   :  { %v52_v14 = vpop.permute.xlu0 %51  }
  0x85   :  { %54 = vst.msk [vmem:[#allocation0] ss:$8 sm:$0x3] %vm53_vm7, %v52_v14  }
  0x8c   :  { %v57_v15 = vld [vmem:[#allocation0] sm:$0x1]  ;;  %v62_v16 = vld [vmem:[#allocation0 + $0x8] sm:$0x1] }
  0x8d   :  { %60 = vst [vmem:[%s130_s1] sm:$0x1] %v57_v15 }
  0x8e   :  { %74 = vst [vmem:[%s130_s1 + $0x1] sm:$0x1] %v62_v16 }

// kernel: discriminator_forward.1
= control target key start
LH: loop header
LB: loop body
LE: loop exit
PB: predicated region body
PF: predicated region fallthrough
CT: control target
= control target key end

     0   :  { %s6495_s1 = inlined_call_operand.vmem [shape: bf16[1024,512], index: 1, kind: input, shape index: {}]   ;;  %s6496_s0 = inlined_call_operand.vmem [shape: bf16[8,1024], index: 0, kind: input, shape index: {}]   ;;  %s6497_s2 = inlined_call_operand.vmem [shape: f32[1,512], index: 2, kind: input, shape index: {}]   ;;  %s6498_s3 = inlined_call_operand.vmem [shape: bf16[512,256], index: 3, kind: input, shape index: {}]   ;;  %s6499_s4 = inlined_call_operand.vmem [shape: f32[1,256], index: 4, kind: input, shape index: {}]   ;;  %s6500_s6 = inlined_call_operand.vmem [shape: f32[1,128], index: 6, kind: input, shape index: {}]   ;;  %s6501_s5 = inlined_call_operand.vmem [shape: bf16[256,128], index: 5, kind: input, shape index: {}]   ;;  %s6502_s7 = inlined_call_operand.vmem [shape: f32[8,128], index: 7, kind: output, shape index: {}]  }
   0x1   :  { %v2809_v0 = vld [vmem:[%s6495_s1 + $0xe0] sm:$0xf]  ;;  %v4069_v1 = vld [vmem:[%s6495_s1 + $0xec] sm:$0xf0] }
   0x2   :  { %v2937_v2 = vld [vmem:[%s6495_s1 + $0x1e0] sm:$0xf]  ;;  %v2810_v3 = vor.u32 %v4069_v1, %v2809_v0  ;;  %v4101_v4 = vld [vmem:[%s6495_s1 + $0x1ec] sm:$0xf0] }
   0x3   :  { %v3065_v5 = vld [vmem:[%s6495_s1 + $0x2e0] sm:$0xf]  ;;  %v4133_v6 = vld [vmem:[%s6495_s1 + $0x2ec] sm:$0xf0]  ;;  %v2938_v7 = vor.u32 %v4101_v4, %v2937_v2 }
   0x4   :  { %v3066_v8 = vor.u32 %v4133_v6, %v3065_v5  ;;  %v3193_v9 = vld [vmem:[%s6495_s1 + $0x3e0] sm:$0xf]  ;;  %v4165_v10 = vld [vmem:[%s6495_s1 + $0x3ec] sm:$0xf0]  ;;  %1604 = vmatpush.bf16.msra.mxu0 %v2810_v3 }
   0x5   :  { %v2793_v11 = vld [vmem:[%s6495_s1 + $0xc0] sm:$0xf]  ;;  %v3194_v12 = vor.u32 %v4165_v10, %v3193_v9  ;;  %v4065_v13 = vld [vmem:[%s6495_s1 + $0xcc] sm:$0xf0]  ;;  %1617 = vmatpush.bf16.msra.mxu1 %v2938_v7 }
   0x6   :  { %v2921_v14 = vld [vmem:[%s6495_s1 + $0x1c0] sm:$0xf]  ;;  %v4097_v15 = vld [vmem:[%s6495_s1 + $0x1cc] sm:$0xf0]  ;;  %1630 = vmatpush.bf16.msra.mxu2 %v3066_v8  ;;  %v2794_v16 = vor.u32 %v4065_v13, %v2793_v11 }
   0x7   :  { %v2922_v17 = vor.u32 %v4097_v15, %v2921_v14  ;;  %v3049_v18 = vld [vmem:[%s6495_s1 + $0x2c0] sm:$0xf]  ;;  %v4129_v19 = vld [vmem:[%s6495_s1 + $0x2cc] sm:$0xf0]  ;;  %1643 = vmatpush.bf16.msra.mxu3 %v3194_v12 }
   0x8   :  { %v3177_v20 = vld [vmem:[%s6495_s1 + $0x3c0] sm:$0xf]  ;;  %v3050_v21 = vor.u32 %v4129_v19, %v3049_v18  ;;  %v4161_v22 = vld [vmem:[%s6495_s1 + $0x3cc] sm:$0xf0]  ;;  %1605 = vmatpush.bf16.msra.mxu0 %v2794_v16 }
   0x9   :  { %v2777_v23 = vld [vmem:[%s6495_s1 + $0xa0] sm:$0xf]  ;;  %v4061_v24 = vld [vmem:[%s6495_s1 + $0xac] sm:$0xf0]  ;;  %v3178_v25 = vor.u32 %v4161_v22, %v3177_v20  ;;  %1618 = vmatpush.bf16.msra.mxu1 %v2922_v17 }
   0xa   :  { %v2905_v26 = vld [vmem:[%s6495_s1 + $0x1a0] sm:$0xf]  ;;  %v4093_v27 = vld [vmem:[%s6495_s1 + $0x1ac] sm:$0xf0]  ;;  %v2778_v29 = vor.u32 %v4061_v24, %v2777_v23  ;;  %1631 = vmatpush.bf16.msra.mxu2 %v3050_v21 }
   0xb   :  { %v3033_v28 = vld [vmem:[%s6495_s1 + $0x2a0] sm:$0xf]  ;;  %v4125_v30 = vld [vmem:[%s6495_s1 + $0x2ac] sm:$0xf0]  ;;  %v2906_v33 = vor.u32 %v4093_v27, %v2905_v26  ;;  %1644 = vmatpush.bf16.msra.mxu3 %v3178_v25 }
   0xc   :  { %v3161_v31 = vld [vmem:[%s6495_s1 + $0x3a0] sm:$0xf]  ;;  %v4157_v32 = vld [vmem:[%s6495_s1 + $0x3ac] sm:$0xf0]  ;;  %v3034_v34 = vor.u32 %v4125_v30, %v3033_v28  ;;  %1606 = vmatpush.bf16.msra.mxu0 %v2778_v29 }
   0xd   :  { %v2761_v35 = vld [vmem:[%s6495_s1 + $0x80] sm:$0xf]  ;;  %v4057_v36 = vld [vmem:[%s6495_s1 + $0x8c] sm:$0xf0]  ;;  %v3162_v38 = vor.u32 %v4157_v32, %v3161_v31  ;;  %1619 = vmatpush.bf16.msra.mxu1 %v2906_v33 }
   0xe   :  { %v2889_v37 = vld [vmem:[%s6495_s1 + $0x180] sm:$0xf]  ;;  %v4089_v39 = vld [vmem:[%s6495_s1 + $0x18c] sm:$0xf0]  ;;  %v2762_v44 = vor.u32 %v4057_v36, %v2761_v35  ;;  %1632 = vmatpush.bf16.msra.mxu2 %v3034_v34 }
   0xf   :  { %v3017_v40 = vld [vmem:[%s6495_s1 + $0x280] sm:$0xf]  ;;  %v4121_v41 = vld [vmem:[%s6495_s1 + $0x28c] sm:$0xf0]  ;;  %v2890_v45 = vor.u32 %v4089_v39, %v2889_v37  ;;  %1645 = vmatpush.bf16.msra.mxu3 %v3162_v38 }
  0x10   :  { %v3145_v42 = vld [vmem:[%s6495_s1 + $0x380] sm:$0xf]  ;;  %v4153_v43 = vld [vmem:[%s6495_s1 + $0x38c] sm:$0xf0]  ;;  %v3018_v46 = vor.u32 %v4121_v41, %v3017_v40  ;;  %1607 = vmatpush.bf16.msra.mxu0 %v2762_v44 }
  0x11   :  { %v2745_v47 = vld [vmem:[%s6495_s1 + $0x60] sm:$0xf]  ;;  %v4053_v48 = vld [vmem:[%s6495_s1 + $0x6c] sm:$0xf0]  ;;  %v3146_v50 = vor.u32 %v4153_v43, %v3145_v42  ;;  %1620 = vmatpush.bf16.msra.mxu1 %v2890_v45 }
  0x12   :  { %v2873_v49 = vld [vmem:[%s6495_s1 + $0x160] sm:$0xf]  ;;  %v4085_v51 = vld [vmem:[%s6495_s1 + $0x16c] sm:$0xf0]  ;;  %v2746_v56 = vor.u32 %v4053_v48, %v2745_v47  ;;  %1633 = vmatpush.bf16.msra.mxu2 %v3018_v46 }
  0x13   :  { %v3001_v52 = vld [vmem:[%s6495_s1 + $0x260] sm:$0xf]  ;;  %v4117_v53 = vld [vmem:[%s6495_s1 + $0x26c] sm:$0xf0]  ;;  %v2874_v57 = vor.u32 %v4085_v51, %v2873_v49  ;;  %1646 = vmatpush.bf16.msra.mxu3 %v3146_v50 }
  0x14   :  { %v3129_v54 = vld [vmem:[%s6495_s1 + $0x360] sm:$0xf]  ;;  %v4149_v55 = vld [vmem:[%s6495_s1 + $0x36c] sm:$0xf0]  ;;  %v3002_v58 = vor.u32 %v4117_v53, %v3001_v52  ;;  %1608 = vmatpush.bf16.msra.mxu0 %v2746_v56 }
  0x15   :  { %v2729_v59 = vld [vmem:[%s6495_s1 + $0x40] sm:$0xf]  ;;  %v4049_v60 = vld [vmem:[%s6495_s1 + $0x4c] sm:$0xf0]  ;;  %v3130_v62 = vor.u32 %v4149_v55, %v3129_v54  ;;  %1621 = vmatpush.bf16.msra.mxu1 %v2874_v57 }
  0x16   :  { %v2857_v61 = vld [vmem:[%s6495_s1 + $0x140] sm:$0xf]  ;;  %v4081_v63 = vld [vmem:[%s6495_s1 + $0x14c] sm:$0xf0]  ;;  %v2730_v4 = vor.u32 %v4049_v60, %v2729_v59  ;;  %1634 = vmatpush.bf16.msra.mxu2 %v3002_v58  ;;  %v27_v58 = vld [vmem:[%s6496_s0 + $0x8] sm:$0xff] }
  0x17   :  { %v2985_v0 = vld [vmem:[%s6495_s1 + $0x240] sm:$0xf]  ;;  %v4113_v1 = vld [vmem:[%s6495_s1 + $0x24c] sm:$0xf0]  ;;  %v2858_v5 = vor.u32 %v4081_v63, %v2857_v61  ;;  %1647 = vmatpush.bf16.msra.mxu3 %v3130_v62  ;;  %v302_v63 = vunpack.c.l.b16 %v27_v58 }
  0x18   :  { %v3113_v2 = vld [vmem:[%s6495_s1 + $0x340] sm:$0xf]  ;;  %v4145_v3 = vld [vmem:[%s6495_s1 + $0x34c] sm:$0xf0]  ;;  %v2986_v6 = vor.u32 %v4113_v1, %v2985_v0  ;;  %1609 = vmatpush.bf16.msra.mxu0 %v2730_v4  ;;  %v303_v0 = vunpack.c.h.b16 %v27_v58 }
  0x19   :  { %v2713_v7 = vld [vmem:[%s6495_s1 + $0x20] sm:$0xf]  ;;  %v4045_v8 = vld [vmem:[%s6495_s1 + $0x2c] sm:$0xf0]  ;;  %v3114_v10 = vor.u32 %v4145_v3, %v3113_v2  ;;  %1622 = vmatpush.bf16.msra.mxu1 %v2858_v5  ;;  %v4684_v4 = vpack.c.b16 %v302_v63, %v302_v63 }
  0x1a   :  { %v2841_v9 = vld [vmem:[%s6495_s1 + $0x120] sm:$0xf]  ;;  %v4077_v11 = vld [vmem:[%s6495_s1 + $0x12c] sm:$0xf0]  ;;  %v2714_v16 = vor.u32 %v4045_v8, %v2713_v7  ;;  %1635 = vmatpush.bf16.msra.mxu2 %v2986_v6  ;;  %v4689_v6 = vpack.c.b16 %v303_v0, %v303_v0 }
  0x1b   :  { %v2969_v12 = vld [vmem:[%s6495_s1 + $0x220] sm:$0xf]  ;;  %v4109_v13 = vld [vmem:[%s6495_s1 + $0x22c] sm:$0xf0]  ;;  %v2842_v19 = vor.u32 %v4077_v11, %v2841_v9  ;;  %1648 = vmatpush.bf16.msra.mxu3 %v3114_v10 }
  0x1c   :  { %v3097_v14 = vld [vmem:[%s6495_s1 + $0x320] sm:$0xf]  ;;  %v4141_v15 = vld [vmem:[%s6495_s1 + $0x32c] sm:$0xf0]  ;;  %v2970_v20 = vor.u32 %v4109_v13, %v2969_v12  ;;  %1610 = vmatpush.bf16.msra.mxu0 %v2714_v16 }
  0x1d   :  { %v2697_v17 = vld [vmem:[%s6495_s1] sm:$0xf]  ;;  %v4041_v18 = vld [vmem:[%s6495_s1 + $0xc] sm:$0xf0]  ;;  %v3098_v24 = vor.u32 %v4141_v15, %v3097_v14  ;;  %1623 = vmatpush.bf16.msra.mxu1 %v2842_v19 }
  0x1e   :  { %v2825_v21 = vld [vmem:[%s6495_s1 + $0x100] sm:$0xf]  ;;  %v4073_v22 = vld [vmem:[%s6495_s1 + $0x10c] sm:$0xf0]  ;;  %v2698_v31 = vor.u32 %v4041_v18, %v2697_v17  ;;  %1636 = vmatpush.bf16.msra.mxu2 %v2970_v20 }
  0x1f   :  { %v2953_v23 = vld [vmem:[%s6495_s1 + $0x200] sm:$0xf]  ;;  %v4105_v25 = vld [vmem:[%s6495_s1 + $0x20c] sm:$0xf0]  ;;  %v2826_v35 = vor.u32 %v4073_v22, %v2825_v21  ;;  %1649 = vmatpush.bf16.msra.mxu3 %v3098_v24 }
  0x20   :  { %v3081_v26 = vld [vmem:[%s6495_s1 + $0x300] sm:$0xf]  ;;  %v4137_v27 = vld [vmem:[%s6495_s1 + $0x30c] sm:$0xf0]  ;;  %v2954_v36 = vor.u32 %v4105_v25, %v2953_v23  ;;  %1611 = vmatpush.bf16.msra.mxu0 %v2698_v31 }
  0x21   :  { %v3321_v28 = vld [vmem:[%s6495_s1 + $0x4e0] sm:$0xf]  ;;  %v4197_v29 = vld [vmem:[%s6495_s1 + $0x4ec] sm:$0xf0]  ;;  %v3082_v39 = vor.u32 %v4137_v27, %v3081_v26  ;;  %1624 = vmatpush.bf16.msra.mxu1 %v2826_v35 }
  0x22   :  { %v3449_v30 = vld [vmem:[%s6495_s1 + $0x5e0] sm:$0xf]  ;;  %v4229_v32 = vld [vmem:[%s6495_s1 + $0x5ec] sm:$0xf0]  ;;  %v3322_v40 = vor.u32 %v4197_v29, %v3321_v28  ;;  %1637 = vmatpush.bf16.msra.mxu2 %v2954_v36 }
  0x23   :  { %v3577_v33 = vld [vmem:[%s6495_s1 + $0x6e0] sm:$0xf]  ;;  %v4261_v34 = vld [vmem:[%s6495_s1 + $0x6ec] sm:$0xf0]  ;;  %v3450_v41 = vor.u32 %v4229_v32, %v3449_v30  ;;  %1650 = vmatpush.bf16.msra.mxu3 %v3082_v39 }
  0x24   :  { %v3705_v37 = vld [vmem:[%s6495_s1 + $0x7e0] sm:$0xf]  ;;  %v4293_v38 = vld [vmem:[%s6495_s1 + $0x7ec] sm:$0xf0]  ;;  %v3578_v42 = vor.u32 %v4261_v34, %v3577_v33  ;;  %1656 = vmatpush.bf16.msrb.mxu0 %v3322_v40 }
  0x25   :  { %v3305_v43 = vld [vmem:[%s6495_s1 + $0x4c0] sm:$0xf]  ;;  %v4193_v44 = vld [vmem:[%s6495_s1 + $0x4cc] sm:$0xf0]  ;;  %v3706_v46 = vor.u32 %v4293_v38, %v3705_v37  ;;  %1669 = vmatpush.bf16.msrb.mxu1 %v3450_v41  ;;  %1638 = vmatmul.bf16.vlgmr.msra.gmra.mxu2 %v4684_v4 }
  0x26   :  { %v3433_v45 = vld [vmem:[%s6495_s1 + $0x5c0] sm:$0xf]  ;;  %v4225_v47 = vld [vmem:[%s6495_s1 + $0x5cc] sm:$0xf0]  ;;  %v3306_v52 = vor.u32 %v4193_v44, %v3305_v43  ;;  %1682 = vmatpush.bf16.msrb.mxu2 %v3578_v42  ;;  %1651 = vmatmul.bf16.vlgmr.msra.gmra.mxu3 %v4689_v6 }
  0x27   :  { %v3561_v48 = vld [vmem:[%s6495_s1 + $0x6c0] sm:$0xf]  ;;  %v4257_v49 = vld [vmem:[%s6495_s1 + $0x6cc] sm:$0xf0]  ;;  %v3434_v54 = vor.u32 %v4225_v47, %v3433_v45  ;;  %1695 = vmatpush.bf16.msrb.mxu3 %v3706_v46 }
  0x28   :  { %v3689_v50 = vld [vmem:[%s6495_s1 + $0x7c0] sm:$0xf]  ;;  %v4289_v51 = vld [vmem:[%s6495_s1 + $0x7cc] sm:$0xf0]  ;;  %v3562_v55 = vor.u32 %v4257_v49, %v3561_v48  ;;  %1657 = vmatpush.bf16.msrb.mxu0 %v3306_v52 }
  0x29   :  { %v3289_v53 = vld [vmem:[%s6495_s1 + $0x4a0] sm:$0xf]  ;;  %v4189_v56 = vld [vmem:[%s6495_s1 + $0x4ac] sm:$0xf0]  ;;  %v3690_v59 = vor.u32 %v4289_v51, %v3689_v50  ;;  %1670 = vmatpush.bf16.msrb.mxu1 %v3434_v54 }
  0x2a   :  { %v3417_v57 = vld [vmem:[%s6495_s1 + $0x5a0] sm:$0xf]  ;;  %v4221_v60 = vld [vmem:[%s6495_s1 + $0x5ac] sm:$0xf0]  ;;  %v3290_v3 = vor.u32 %v4189_v56, %v3289_v53  ;;  %1683 = vmatpush.bf16.msrb.mxu2 %v3562_v55 }
  0x2b   :  { %v3545_v61 = vld [vmem:[%s6495_s1 + $0x6a0] sm:$0xf]  ;;  %v4253_v62 = vld [vmem:[%s6495_s1 + $0x6ac] sm:$0xf0]  ;;  %v3418_v7 = vor.u32 %v4221_v60, %v3417_v57  ;;  %1696 = vmatpush.bf16.msrb.mxu3 %v3690_v59 }
  0x2c   :  { %v3673_v1 = vld [vmem:[%s6495_s1 + $0x7a0] sm:$0xf]  ;;  %v4285_v2 = vld [vmem:[%s6495_s1 + $0x7ac] sm:$0xf0]  ;;  %v3546_v8 = vor.u32 %v4253_v62, %v3545_v61  ;;  %1658 = vmatpush.bf16.msrb.mxu0 %v3290_v3  ;;  %v29_v3 = vld [vmem:[%s6496_s0 + $0x18] sm:$0xff] }
  0x2d   :  { %v26_v5 = vld [vmem:[%s6496_s0] sm:$0xff]  ;;  %v4185_v10 = vld [vmem:[%s6495_s1 + $0x48c] sm:$0xf0]  ;;  %v3674_v14 = vor.u32 %v4285_v2, %v3673_v1  ;;  %1671 = vmatpush.bf16.msrb.mxu1 %v3418_v7 }
  0x2e   :  { %v3273_v9 = vld [vmem:[%s6495_s1 + $0x480] sm:$0xf]  ;;  %v300_v12 = vunpack.c.l.b16 %v26_v5  ;;  %v301_v13 = vunpack.c.h.b16 %v26_v5  ;;  %v4217_v15 = vld [vmem:[%s6495_s1 + $0x58c] sm:$0xf0]  ;;  %1684 = vmatpush.bf16.msrb.mxu2 %v3546_v8 }
  0x2f   :  { %v3401_v11 = vld [vmem:[%s6495_s1 + $0x580] sm:$0xf]  ;;  %v4249_v17 = vld [vmem:[%s6495_s1 + $0x68c] sm:$0xf0]  ;;  %v3274_v22 = vor.u32 %v4185_v10, %v3273_v9  ;;  %1697 = vmatpush.bf16.msrb.mxu3 %v3674_v14  ;;  %v4067_v10 = vld [vmem:[%s6495_s1 + $0xe4] sm:$0xf] }
  0x30   :  { %v3529_v16 = vld [vmem:[%s6495_s1 + $0x680] sm:$0xf]  ;;  %v4281_v19 = vld [vmem:[%s6495_s1 + $0x78c] sm:$0xf0]  ;;  %v4716_v20 = vpack.c.b16 %v300_v12, %v300_v12  ;;  %v4719_v21 = vpack.c.b16 %v301_v13, %v301_v13  ;;  %v3402_v23 = vor.u32 %v4217_v15, %v3401_v11  ;;  %v2811_v11 = vld [vmem:[%s6495_s1 + $0xf0] sm:$0xf0] }
  0x31   :  { %v3657_v18 = vld [vmem:[%s6495_s1 + $0x780] sm:$0xf]  ;;  %v3530_v24 = vor.u32 %v4249_v17, %v3529_v16  ;;  %v4181_v26 = vld [vmem:[%s6495_s1 + $0x46c] sm:$0xf0]  ;;  %1659 = vmatpush.bf16.msrb.mxu0 %v3274_v22  ;;  %v4099_v12 = vld [vmem:[%s6495_s1 + $0x1e4] sm:$0xf]  ;;  %v306_v17 = vunpack.c.l.b16 %v29_v3 }
  0x32   :  { %v3257_v25 = vld [vmem:[%s6495_s1 + $0x460] sm:$0xf]  ;;  %v3658_v28 = vor.u32 %v4281_v19, %v3657_v18  ;;  %v4213_v29 = vld [vmem:[%s6495_s1 + $0x56c] sm:$0xf0]  ;;  %1612 = vmatmul.bf16.vlgmr.msra.gmra.mxu0 %v4716_v20  ;;  %1625 = vmatmul.bf16.vlgmr.msra.gmra.mxu1 %v4719_v21  ;;  %v2939_v14 = vld [vmem:[%s6495_s1 + $0x1f0] sm:$0xf0] }
  0x33   :  { %v3385_v27 = vld [vmem:[%s6495_s1 + $0x560] sm:$0xf]  ;;  %v4245_v31 = vld [vmem:[%s6495_s1 + $0x66c] sm:$0xf0]  ;;  %v3258_v34 = vor.u32 %v4181_v26, %v3257_v25  ;;  %1672 = vmatpush.bf16.msrb.mxu1 %v3402_v23  ;;  %1685 = vmatpush.bf16.msrb.mxu2 %v3530_v24  ;;  %v4131_v15 = vld [vmem:[%s6495_s1 + $0x2e4] sm:$0xf]  ;;  %v307_v25 = vunpack.c.h.b16 %v29_v3 }
  0x34   :  { %v3513_v30 = vld [vmem:[%s6495_s1 + $0x660] sm:$0xf]  ;;  %v4277_v33 = vld [vmem:[%s6495_s1 + $0x76c] sm:$0xf0]  ;;  %v3386_v35 = vor.u32 %v4213_v29, %v3385_v27  ;;  %1698 = vmatpush.bf16.msrb.mxu3 %v3658_v28  ;;  %v3067_v16 = vld [vmem:[%s6495_s1 + $0x2f0] sm:$0xf0]  ;;  %v2814_v27 = vor.u32 %v4067_v10, %v2811_v11  ;;  %v2942_v29 = vor.u32 %v4099_v12, %v2939_v14 }
  0x35   :  { %v3641_v32 = vld [vmem:[%s6495_s1 + $0x760] sm:$0xf]  ;;  %v3514_v36 = vor.u32 %v4245_v31, %v3513_v30  ;;  %v4177_v38 = vld [vmem:[%s6495_s1 + $0x44c] sm:$0xf0]  ;;  %1660 = vmatpush.bf16.msrb.mxu0 %v3258_v34  ;;  %v4163_v22 = vld [vmem:[%s6495_s1 + $0x3e4] sm:$0xf]  ;;  %v3070_v30 = vor.u32 %v4131_v15, %v3067_v16 }
  0x36   :  { %v3241_v37 = vld [vmem:[%s6495_s1 + $0x440] sm:$0xf]  ;;  %v3642_v40 = vor.u32 %v4277_v33, %v3641_v32  ;;  %v4209_v41 = vld [vmem:[%s6495_s1 + $0x54c] sm:$0xf0]  ;;  %v3195_v23 = vld [vmem:[%s6495_s1 + $0x3f0] sm:$0xf0] }
  0x37   :  { %v3369_v39 = vld [vmem:[%s6495_s1 + $0x540] sm:$0xf]  ;;  %v4241_v43 = vld [vmem:[%s6495_s1 + $0x64c] sm:$0xf0]  ;;  %v3242_v46 = vor.u32 %v4177_v38, %v3241_v37  ;;  %1673 = vmatpush.bf16.msrb.mxu1 %v3386_v35  ;;  %1686 = vmatpush.bf16.msrb.mxu2 %v3514_v36  ;;  %v4063_v31 = vld [vmem:[%s6495_s1 + $0xc4] sm:$0xf]  ;;  %v3198_v34 = vor.u32 %v4163_v22, %v3195_v23  ;;  %v4867_v38 = vpack.c.b16 %v306_v17, %v306_v17 }
  0x38   :  { %v3497_v42 = vld [vmem:[%s6495_s1 + $0x640] sm:$0xf]  ;;  %v4273_v45 = vld [vmem:[%s6495_s1 + $0x74c] sm:$0xf0]  ;;  %v3370_v47 = vor.u32 %v4209_v41, %v3369_v39  ;;  %1699 = vmatpush.bf16.msrb.mxu3 %v3642_v40  ;;  %v2795_v32 = vld [vmem:[%s6495_s1 + $0xd0] sm:$0xf0] }
  0x39   :  { %v3625_v44 = vld [vmem:[%s6495_s1 + $0x740] sm:$0xf]  ;;  %v3498_v48 = vor.u32 %v4241_v43, %v3497_v42  ;;  %v4173_v50 = vld [vmem:[%s6495_s1 + $0x42c] sm:$0xf0]  ;;  %1661 = vmatpush.bf16.msrb.mxu0 %v3242_v46  ;;  %v4095_v33 = vld [vmem:[%s6495_s1 + $0x1c4] sm:$0xf]  ;;  %v4877_v42 = vpack.c.b16 %v307_v25, %v307_v25  ;;  %v2798_v43 = vor.u32 %v4063_v31, %v2795_v32 }
  0x3a   :  { %v3225_v49 = vld [vmem:[%s6495_s1 + $0x420] sm:$0xf]  ;;  %v3626_v52 = vor.u32 %v4273_v45, %v3625_v44  ;;  %v4205_v53 = vld [vmem:[%s6495_s1 + $0x52c] sm:$0xf0]  ;;  %v2923_v35 = vld [vmem:[%s6495_s1 + $0x1d0] sm:$0xf0] }
  0x3b   :  { %v3353_v51 = vld [vmem:[%s6495_s1 + $0x520] sm:$0xf]  ;;  %v4237_v55 = vld [vmem:[%s6495_s1 + $0x62c] sm:$0xf0]  ;;  %v3226_v59 = vor.u32 %v4173_v50, %v3225_v49  ;;  %1674 = vmatpush.bf16.msrb.mxu1 %v3370_v47  ;;  %1687 = vmatpush.bf16.msrb.mxu2 %v3498_v48  ;;  %v4127_v36 = vld [vmem:[%s6495_s1 + $0x2c4] sm:$0xf]  ;;  %v2926_v45 = vor.u32 %v4095_v33, %v2923_v35 }
  0x3c   :  { %v3481_v54 = vld [vmem:[%s6495_s1 + $0x620] sm:$0xf]  ;;  %v4269_v57 = vld [vmem:[%s6495_s1 + $0x72c] sm:$0xf0]  ;;  %v3354_v63 = vor.u32 %v4205_v53, %v3353_v51  ;;  %1700 = vmatpush.bf16.msrb.mxu3 %v3626_v52  ;;  %v3051_v37 = vld [vmem:[%s6495_s1 + $0x2d0] sm:$0xf0] }
  0x3d   :  { %v3609_v56 = vld [vmem:[%s6495_s1 + $0x720] sm:$0xf]  ;;  %v4169_v60 = vld [vmem:[%s6495_s1 + $0x40c] sm:$0xf0]  ;;  %v3482_v0 = vor.u32 %v4237_v55, %v3481_v54  ;;  %1662 = vmatpush.bf16.msrb.mxu0 %v3226_v59  ;;  %v4159_v39 = vld [vmem:[%s6495_s1 + $0x3c4] sm:$0xf]  ;;  %v3054_v46 = vor.u32 %v4127_v36, %v3051_v37 }
  0x3e   :  { %v3209_v58 = vld [vmem:[%s6495_s1 + $0x400] sm:$0xf]  ;;  %v4201_v62 = vld [vmem:[%s6495_s1 + $0x50c] sm:$0xf0]  ;;  %v3610_v5 = vor.u32 %v4269_v57, %v3609_v56  ;;  %v3179_v40 = vld [vmem:[%s6495_s1 + $0x3d0] sm:$0xf0] }
  0x3f   :  { %v3337_v61 = vld [vmem:[%s6495_s1 + $0x500] sm:$0xf]  ;;  %v4233_v2 = vld [vmem:[%s6495_s1 + $0x60c] sm:$0xf0]  ;;  %v3210_v13 = vor.u32 %v4169_v60, %v3209_v58  ;;  %1675 = vmatpush.bf16.msrb.mxu1 %v3354_v63  ;;  %1688 = vmatpush.bf16.msrb.mxu2 %v3482_v0  ;;  %v4059_v47 = vld [vmem:[%s6495_s1 + $0xa4] sm:$0xf]  ;;  %v3182_v50 = vor.u32 %v4159_v39, %v3179_v40 }
  0x40   :  { %v3465_v1 = vld [vmem:[%s6495_s1 + $0x600] sm:$0xf]  ;;  %v4265_v8 = vld [vmem:[%s6495_s1 + $0x70c] sm:$0xf0]  ;;  %v3338_v18 = vor.u32 %v4201_v62, %v3337_v61  ;;  %1701 = vmatpush.bf16.msrb.mxu3 %v3610_v5  ;;  %v2779_v48 = vld [vmem:[%s6495_s1 + $0xb0] sm:$0xf0] }
  0x41   :  { %v3593_v7 = vld [vmem:[%s6495_s1 + $0x700] sm:$0xf]  ;;  %v28_v9 = vld [vmem:[%s6496_s0 + $0x10] sm:$0xff]  ;;  %v3466_v19 = vor.u32 %v4233_v2, %v3465_v1  ;;  %1663 = vmatpush.bf16.msrb.mxu0 %v3210_v13  ;;  %v4091_v49 = vld [vmem:[%s6495_s1 + $0x1a4] sm:$0xf]  ;;  %v2782_v56 = vor.u32 %v4059_v47, %v2779_v48 }
  0x42   :  { %v304_v24 = vunpack.c.l.b16 %v28_v9  ;;  %v3594_v26 = vor.u32 %v4265_v8, %v3593_v7  ;;  %v305_v28 = vunpack.c.h.b16 %v28_v9  ;;  %v2907_v51 = vld [vmem:[%s6495_s1 + $0x1b0] sm:$0xf0]  ;;  %v4123_v52 = vld [vmem:[%s6495_s1 + $0x2a4] sm:$0xf] }
  0x43   :  { %1676 = vmatpush.bf16.msrb.mxu1 %v3338_v18  ;;  %1689 = vmatpush.bf16.msrb.mxu2 %v3466_v19  ;;  %v3035_v53 = vld [vmem:[%s6495_s1 + $0x2b0] sm:$0xf0]  ;;  %v4155_v54 = vld [vmem:[%s6495_s1 + $0x3a4] sm:$0xf]  ;;  %v2910_v57 = vor.u32 %v4091_v49, %v2907_v51 }
  0x44   :  { %v4875_v41 = vpack.c.b16 %v304_v24, %v304_v24  ;;  %1702 = vmatpush.bf16.msrb.mxu3 %v3594_v26  ;;  %v4879_v44 = vpack.c.b16 %v305_v28, %v305_v28  ;;  %v3163_v55 = vld [vmem:[%s6495_s1 + $0x3b0] sm:$0xf0]  ;;  %v3038_v58 = vor.u32 %v4123_v52, %v3035_v53  ;;  %v4055_v59 = vld [vmem:[%s6495_s1 + $0x84] sm:$0xf] }
  0x45   :  { %1708 = vmatpush.bf16.msra.mxu0 %v2814_v27  ;;  %v2763_v60 = vld [vmem:[%s6495_s1 + $0x90] sm:$0xf0]  ;;  %v4087_v61 = vld [vmem:[%s6495_s1 + $0x184] sm:$0xf]  ;;  %v3166_v62 = vor.u32 %v4155_v54, %v3163_v55 }
  0x46   :  { %1690 = vmatmul.bf16.vlgmr.msrb.gmra.mxu2 %v4867_v38  ;;  %1664 = vmatmul.bf16.vlgmr.msrb.gmra.mxu0 %v4875_v41  ;;  %v2891_v63 = vld [vmem:[%s6495_s1 + $0x190] sm:$0xf0]  ;;  %v4119_v0 = vld [vmem:[%s6495_s1 + $0x284] sm:$0xf]  ;;  %v2766_v5 = vor.u32 %v4055_v59, %v2763_v60 }
  0x47   :  { %1721 = vmatpush.bf16.msra.mxu1 %v2942_v29  ;;  %1734 = vmatpush.bf16.msra.mxu2 %v3070_v30  ;;  %v3019_v1 = vld [vmem:[%s6495_s1 + $0x290] sm:$0xf0]  ;;  %v4151_v2 = vld [vmem:[%s6495_s1 + $0x384] sm:$0xf]  ;;  %v2894_v7 = vor.u32 %v4087_v61, %v2891_v63 }
  0x48   :  { %1747 = vmatpush.bf16.msra.mxu3 %v3198_v34  ;;  %1677 = vmatmul.bf16.vlgmr.msrb.gmra.mxu1 %v4879_v44  ;;  %v3147_v3 = vld [vmem:[%s6495_s1 + $0x390] sm:$0xf0]  ;;  %v3022_v8 = vor.u32 %v4119_v0, %v3019_v1  ;;  %v4051_v9 = vld [vmem:[%s6495_s1 + $0x64] sm:$0xf] }
  0x49   :  { %1703 = vmatmul.bf16.vlgmr.msrb.gmra.mxu3 %v4877_v42  ;;  %1709 = vmatpush.bf16.msra.mxu0 %v2798_v43  ;;  %v2747_v10 = vld [vmem:[%s6495_s1 + $0x70] sm:$0xf0]  ;;  %v4083_v11 = vld [vmem:[%s6495_s1 + $0x164] sm:$0xf]  ;;  %v3150_v12 = vor.u32 %v4151_v2, %v3147_v3 }
  0x4a   :  { %v2875_v13 = vld [vmem:[%s6495_s1 + $0x170] sm:$0xf0]  ;;  %v4115_v14 = vld [vmem:[%s6495_s1 + $0x264] sm:$0xf]  ;;  %v2750_v18 = vor.u32 %v4051_v9, %v2747_v10 }
  0x4b   :  { %1722 = vmatpush.bf16.msra.mxu1 %v2926_v45  ;;  %1735 = vmatpush.bf16.msra.mxu2 %v3054_v46  ;;  %v3003_v15 = vld [vmem:[%s6495_s1 + $0x270] sm:$0xf0]  ;;  %v4147_v16 = vld [vmem:[%s6495_s1 + $0x364] sm:$0xf]  ;;  %v2878_v19 = vor.u32 %v4083_v11, %v2875_v13 }
  0x4c   :  { %1748 = vmatpush.bf16.msra.mxu3 %v3182_v50  ;;  %v3131_v17 = vld [vmem:[%s6495_s1 + $0x370] sm:$0xf0]  ;;  %v3006_v22 = vor.u32 %v4115_v14, %v3003_v15  ;;  %v4047_v23 = vld [vmem:[%s6495_s1 + $0x44] sm:$0xf] }
  0x4d   :  { %1710 = vmatpush.bf16.msra.mxu0 %v2782_v56  ;;  %v2731_v24 = vld [vmem:[%s6495_s1 + $0x50] sm:$0xf0]  ;;  %v4079_v25 = vld [vmem:[%s6495_s1 + $0x144] sm:$0xf]  ;;  %v3134_v26 = vor.u32 %v4147_v16, %v3131_v17 }
  0x4e   :  { %v2859_v27 = vld [vmem:[%s6495_s1 + $0x150] sm:$0xf0]  ;;  %v4111_v28 = vld [vmem:[%s6495_s1 + $0x244] sm:$0xf]  ;;  %v2734_v32 = vor.u32 %v4047_v23, %v2731_v24 }
  0x4f   :  { %1723 = vmatpush.bf16.msra.mxu1 %v2910_v57  ;;  %1736 = vmatpush.bf16.msra.mxu2 %v3038_v58  ;;  %v2987_v29 = vld [vmem:[%s6495_s1 + $0x250] sm:$0xf0]  ;;  %v4143_v30 = vld [vmem:[%s6495_s1 + $0x344] sm:$0xf]  ;;  %v2862_v33 = vor.u32 %v4079_v25, %v2859_v27 }
  0x50   :  { %1749 = vmatpush.bf16.msra.mxu3 %v3166_v62  ;;  %v3115_v31 = vld [vmem:[%s6495_s1 + $0x350] sm:$0xf0]  ;;  %v2990_v34 = vor.u32 %v4111_v28, %v2987_v29  ;;  %v4043_v35 = vld [vmem:[%s6495_s1 + $0x24] sm:$0xf] }
  0x51   :  { %1711 = vmatpush.bf16.msra.mxu0 %v2766_v5  ;;  %v2715_v36 = vld [vmem:[%s6495_s1 + $0x30] sm:$0xf0]  ;;  %v4075_v37 = vld [vmem:[%s6495_s1 + $0x124] sm:$0xf]  ;;  %v3118_v39 = vor.u32 %v4143_v30, %v3115_v31 }
  0x52   :  { %v2843_v40 = vld [vmem:[%s6495_s1 + $0x130] sm:$0xf0]  ;;  %v4107_v43 = vld [vmem:[%s6495_s1 + $0x224] sm:$0xf]  ;;  %v2718_v48 = vor.u32 %v4043_v35, %v2715_v36 }
  0x53   :  { %1724 = vmatpush.bf16.msra.mxu1 %v2894_v7  ;;  %1737 = vmatpush.bf16.msra.mxu2 %v3022_v8  ;;  %v2971_v45 = vld [vmem:[%s6495_s1 + $0x230] sm:$0xf0]  ;;  %v4139_v46 = vld [vmem:[%s6495_s1 + $0x324] sm:$0xf]  ;;  %v2846_v51 = vor.u32 %v4075_v37, %v2843_v40 }
  0x54   :  { %1750 = vmatpush.bf16.msra.mxu3 %v3150_v12  ;;  %v3099_v47 = vld [vmem:[%s6495_s1 + $0x330] sm:$0xf0]  ;;  %v4039_v49 = vld [vmem:[%s6495_s1 + $0x4] sm:$0xf]  ;;  %v2974_v52 = vor.u32 %v4107_v43, %v2971_v45 }
  0x55   :  { %1712 = vmatpush.bf16.msra.mxu0 %v2750_v18  ;;  %v2699_v50 = vld [vmem:[%s6495_s1 + $0x10] sm:$0xf0]  ;;  %v4071_v53 = vld [vmem:[%s6495_s1 + $0x104] sm:$0xf]  ;;  %v3102_v56 = vor.u32 %v4139_v46, %v3099_v47 }
  0x56   :  { %v2827_v54 = vld [vmem:[%s6495_s1 + $0x110] sm:$0xf0]  ;;  %v4103_v55 = vld [vmem:[%s6495_s1 + $0x204] sm:$0xf]  ;;  %v2702_v63 = vor.u32 %v4039_v49, %v2699_v50 }
  0x57   :  { %1725 = vmatpush.bf16.msra.mxu1 %v2878_v19  ;;  %1738 = vmatpush.bf16.msra.mxu2 %v3006_v22  ;;  %v2955_v57 = vld [vmem:[%s6495_s1 + $0x210] sm:$0xf0]  ;;  %v4135_v58 = vld [vmem:[%s6495_s1 + $0x304] sm:$0xf]  ;;  %v2830_v3 = vor.u32 %v4071_v53, %v2827_v54 }
  0x58   :  { %1751 = vmatpush.bf16.msra.mxu3 %v3134_v26  ;;  %v3083_v59 = vld [vmem:[%s6495_s1 + $0x310] sm:$0xf0]  ;;  %v4195_v60 = vld [vmem:[%s6495_s1 + $0x4e4] sm:$0xf]  ;;  %v2958_v5 = vor.u32 %v4103_v55, %v2955_v57 }
  0x59   :  { %1713 = vmatpush.bf16.msra.mxu0 %v2734_v32  ;;  %v3323_v61 = vld [vmem:[%s6495_s1 + $0x4f0] sm:$0xf0]  ;;  %v4227_v62 = vld [vmem:[%s6495_s1 + $0x5e4] sm:$0xf]  ;;  %v3086_v9 = vor.u32 %v4135_v58, %v3083_v59 }
  0x5a   :  { %v3451_v0 = vld [vmem:[%s6495_s1 + $0x5f0] sm:$0xf0]  ;;  %v4259_v1 = vld [vmem:[%s6495_s1 + $0x6e4] sm:$0xf]  ;;  %v3326_v10 = vor.u32 %v4195_v60, %v3323_v61 }
  0x5b   :  { %1726 = vmatpush.bf16.msra.mxu1 %v2862_v33  ;;  %1739 = vmatpush.bf16.msra.mxu2 %v2990_v34  ;;  %v3579_v2 = vld [vmem:[%s6495_s1 + $0x6f0] sm:$0xf0]  ;;  %v4291_v7 = vld [vmem:[%s6495_s1 + $0x7e4] sm:$0xf]  ;;  %v3454_v11 = vor.u32 %v4227_v62, %v3451_v0 }
  0x5c   :  { %1752 = vmatpush.bf16.msra.mxu3 %v3118_v39  ;;  %v3707_v8 = vld [vmem:[%s6495_s1 + $0x7f0] sm:$0xf0]  ;;  %v3582_v12 = vor.u32 %v4259_v1, %v3579_v2  ;;  %v4191_v13 = vld [vmem:[%s6495_s1 + $0x4c4] sm:$0xf] }
  0x5d   :  { %1714 = vmatpush.bf16.msra.mxu0 %v2718_v48  ;;  %v3307_v14 = vld [vmem:[%s6495_s1 + $0x4d0] sm:$0xf0]  ;;  %v4223_v15 = vld [vmem:[%s6495_s1 + $0x5c4] sm:$0xf]  ;;  %v3710_v16 = vor.u32 %v4291_v7, %v3707_v8 }
  0x5e   :  { %v3435_v17 = vld [vmem:[%s6495_s1 + $0x5d0] sm:$0xf0]  ;;  %v4255_v18 = vld [vmem:[%s6495_s1 + $0x6c4] sm:$0xf]  ;;  %v3310_v24 = vor.u32 %v4191_v13, %v3307_v14 }
  0x5f   :  { %1727 = vmatpush.bf16.msra.mxu1 %v2846_v51  ;;  %1740 = vmatpush.bf16.msra.mxu2 %v2974_v52  ;;  %v3563_v19 = vld [vmem:[%s6495_s1 + $0x6d0] sm:$0xf0]  ;;  %v4287_v22 = vld [vmem:[%s6495_s1 + $0x7c4] sm:$0xf]  ;;  %v3438_v25 = vor.u32 %v4223_v15, %v3435_v17 }
  0x60   :  { %1753 = vmatpush.bf16.msra.mxu3 %v3102_v56  ;;  %v3691_v23 = vld [vmem:[%s6495_s1 + $0x7d0] sm:$0xf0]  ;;  %v3566_v26 = vor.u32 %v4255_v18, %v3563_v19  ;;  %v4187_v27 = vld [vmem:[%s6495_s1 + $0x4a4] sm:$0xf] }
  0x61   :  { %1715 = vmatpush.bf16.msra.mxu0 %v2702_v63  ;;  %v3291_v28 = vld [vmem:[%s6495_s1 + $0x4b0] sm:$0xf0]  ;;  %v4219_v29 = vld [vmem:[%s6495_s1 + $0x5a4] sm:$0xf]  ;;  %v3694_v30 = vor.u32 %v4287_v22, %v3691_v23 }
  0x62   :  { %v3419_v31 = vld [vmem:[%s6495_s1 + $0x5b0] sm:$0xf0]  ;;  %v4251_v32 = vld [vmem:[%s6495_s1 + $0x6a4] sm:$0xf]  ;;  %v3294_v36 = vor.u32 %v4187_v27, %v3291_v28 }
  0x63   :  { %1728 = vmatpush.bf16.msra.mxu1 %v2830_v3  ;;  %1741 = vmatpush.bf16.msra.mxu2 %v2958_v5  ;;  %v3547_v33 = vld [vmem:[%s6495_s1 + $0x6b0] sm:$0xf0]  ;;  %v4283_v34 = vld [vmem:[%s6495_s1 + $0x7a4] sm:$0xf]  ;;  %v3422_v37 = vor.u32 %v4219_v29, %v3419_v31 }
  0x64   :  { %1754 = vmatpush.bf16.msra.mxu3 %v3086_v9  ;;  %v3675_v35 = vld [vmem:[%s6495_s1 + $0x7b0] sm:$0xf0]  ;;  %1716 = vmatmul.bf16.vlgmr.msra.gmra.mxu0 %v4716_v20  ;;  %v3550_v39 = vor.u32 %v4251_v32, %v3547_v33  ;;  %v4183_v40 = vld [vmem:[%s6495_s1 + $0x484] sm:$0xf] }
  0x65   :  { %1760 = vmatpush.bf16.msrb.mxu0 %v3326_v10  ;;  %v3275_v43 = vld [vmem:[%s6495_s1 + $0x490] sm:$0xf0]  ;;  %v4215_v45 = vld [vmem:[%s6495_s1 + $0x584] sm:$0xf]  ;;  %v3678_v46 = vor.u32 %v4283_v34, %v3675_v35 }
  0x66   :  { %1742 = vmatmul.bf16.vlgmr.msra.gmra.mxu2 %v4684_v4  ;;  %1729 = vmatmul.bf16.vlgmr.msra.gmra.mxu1 %v4719_v21  ;;  %v3403_v47 = vld [vmem:[%s6495_s1 + $0x590] sm:$0xf0]  ;;  %v4247_v48 = vld [vmem:[%s6495_s1 + $0x684] sm:$0xf]  ;;  %v3278_v52 = vor.u32 %v4183_v40, %v3275_v43  ;;  %v2817_v43 = vld [vmem:[%s6495_s1 + $0xe8] sm:$0xf] }
  0x67   :  { %1773 = vmatpush.bf16.msrb.mxu1 %v3454_v11  ;;  %1786 = vmatpush.bf16.msrb.mxu2 %v3582_v12  ;;  %v3531_v49 = vld [vmem:[%s6495_s1 + $0x690] sm:$0xf0]  ;;  %v4279_v50 = vld [vmem:[%s6495_s1 + $0x784] sm:$0xf]  ;;  %v3406_v53 = vor.u32 %v4215_v45, %v3403_v47  ;;  %v4070_v45 = vld [vmem:[%s6495_s1 + $0xf4] sm:$0xf0] }
  0x68   :  { %1799 = vmatpush.bf16.msrb.mxu3 %v3710_v16  ;;  %v3659_v51 = vld [vmem:[%s6495_s1 + $0x790] sm:$0xf0]  ;;  %v3534_v54 = vor.u32 %v4247_v48, %v3531_v49  ;;  %v4179_v55 = vld [vmem:[%s6495_s1 + $0x464] sm:$0xf]  ;;  %v4102_v48 = vld [vmem:[%s6495_s1 + $0x1f4] sm:$0xf0] }
  0x69   :  { %1755 = vmatmul.bf16.vlgmr.msra.gmra.mxu3 %v4689_v6  ;;  %1761 = vmatpush.bf16.msrb.mxu0 %v3310_v24  ;;  %v3259_v56 = vld [vmem:[%s6495_s1 + $0x470] sm:$0xf0]  ;;  %v4211_v57 = vld [vmem:[%s6495_s1 + $0x564] sm:$0xf]  ;;  %v3662_v58 = vor.u32 %v4279_v50, %v3659_v51  ;;  %v3073_v49 = vld [vmem:[%s6495_s1 + $0x2e8] sm:$0xf] }
  0x6a   :  { %v3387_v59 = vld [vmem:[%s6495_s1 + $0x570] sm:$0xf0]  ;;  %v4243_v60 = vld [vmem:[%s6495_s1 + $0x664] sm:$0xf]  ;;  %v3262_v0 = vor.u32 %v4179_v55, %v3259_v56  ;;  %v4134_v50 = vld [vmem:[%s6495_s1 + $0x2f4] sm:$0xf0]  ;;  %v2818_v56 = vor.u32 %v4070_v45, %v2817_v43 }
  0x6b   :  { %1774 = vmatpush.bf16.msrb.mxu1 %v3438_v25  ;;  %1787 = vmatpush.bf16.msrb.mxu2 %v3566_v26  ;;  %v3515_v61 = vld [vmem:[%s6495_s1 + $0x670] sm:$0xf0]  ;;  %v4275_v62 = vld [vmem:[%s6495_s1 + $0x764] sm:$0xf]  ;;  %v3390_v1 = vor.u32 %v4211_v57, %v3387_v59  ;;  %v2801_v59 = vld [vmem:[%s6495_s1 + $0xc8] sm:$0xf] }
  0x6c   :  { %1800 = vmatpush.bf16.msrb.mxu3 %v3694_v30  ;;  %v3643_v63 = vld [vmem:[%s6495_s1 + $0x770] sm:$0xf0]  ;;  %v3518_v2 = vor.u32 %v4243_v60, %v3515_v61  ;;  %v4175_v3 = vld [vmem:[%s6495_s1 + $0x444] sm:$0xf]  ;;  %v4066_v60 = vld [vmem:[%s6495_s1 + $0xd4] sm:$0xf0] }
  0x6d   :  { %1762 = vmatpush.bf16.msrb.mxu0 %v3294_v36  ;;  %v3243_v5 = vld [vmem:[%s6495_s1 + $0x450] sm:$0xf0]  ;;  %v4207_v7 = vld [vmem:[%s6495_s1 + $0x544] sm:$0xf]  ;;  %v3646_v8 = vor.u32 %v4275_v62, %v3643_v63  ;;  %v2929_v61 = vld [vmem:[%s6495_s1 + $0x1c8] sm:$0xf] }
  0x6e   :  { %v3371_v9 = vld [vmem:[%s6495_s1 + $0x550] sm:$0xf0]  ;;  %v4239_v10 = vld [vmem:[%s6495_s1 + $0x644] sm:$0xf]  ;;  %v3246_v14 = vor.u32 %v4175_v3, %v3243_v5  ;;  %v4098_v63 = vld [vmem:[%s6495_s1 + $0x1d4] sm:$0xf0]  ;;  %v2802_v5 = vor.u32 %v4066_v60, %v2801_v59 }
  0x6f   :  { %1775 = vmatpush.bf16.msrb.mxu1 %v3422_v37  ;;  %1788 = vmatpush.bf16.msrb.mxu2 %v3550_v39  ;;  %v3499_v11 = vld [vmem:[%s6495_s1 + $0x650] sm:$0xf0]  ;;  %v4271_v12 = vld [vmem:[%s6495_s1 + $0x744] sm:$0xf]  ;;  %v3374_v15 = vor.u32 %v4207_v7, %v3371_v9  ;;  %v4162_v3 = vld [vmem:[%s6495_s1 + $0x3d4] sm:$0xf0]  ;;  %v2930_v7 = vor.u32 %v4098_v63, %v2929_v61 }
  0x70   :  { %1801 = vmatpush.bf16.msrb.mxu3 %v3678_v46  ;;  %v3627_v13 = vld [vmem:[%s6495_s1 + $0x750] sm:$0xf0]  ;;  %v3502_v16 = vor.u32 %v4239_v10, %v3499_v11  ;;  %v4171_v17 = vld [vmem:[%s6495_s1 + $0x424] sm:$0xf]  ;;  %v2945_v46 = vld [vmem:[%s6495_s1 + $0x1e8] sm:$0xf] }
  0x71   :  { %1763 = vmatpush.bf16.msrb.mxu0 %v3278_v52  ;;  %v3227_v18 = vld [vmem:[%s6495_s1 + $0x430] sm:$0xf0]  ;;  %v4203_v19 = vld [vmem:[%s6495_s1 + $0x524] sm:$0xf]  ;;  %v3630_v22 = vor.u32 %v4271_v12, %v3627_v13  ;;  %v2946_v57 = vor.u32 %v4102_v48, %v2945_v46  ;;  %v2785_v9 = vld [vmem:[%s6495_s1 + $0xa8] sm:$0xf] }
  0x72   :  { %v3355_v23 = vld [vmem:[%s6495_s1 + $0x530] sm:$0xf0]  ;;  %v4235_v24 = vld [vmem:[%s6495_s1 + $0x624] sm:$0xf]  ;;  %v3230_v28 = vor.u32 %v4171_v17, %v3227_v18  ;;  %v4062_v10 = vld [vmem:[%s6495_s1 + $0xb4] sm:$0xf0] }
  0x73   :  { %1776 = vmatpush.bf16.msrb.mxu1 %v3406_v53  ;;  %1789 = vmatpush.bf16.msrb.mxu2 %v3534_v54  ;;  %v3483_v25 = vld [vmem:[%s6495_s1 + $0x630] sm:$0xf0]  ;;  %v4267_v26 = vld [vmem:[%s6495_s1 + $0x724] sm:$0xf]  ;;  %v3358_v31 = vor.u32 %v4203_v19, %v3355_v23  ;;  %v3201_v53 = vld [vmem:[%s6495_s1 + $0x3e8] sm:$0xf]  ;;  %v2786_v18 = vor.u32 %v4062_v10, %v2785_v9 }
  0x74   :  { %1802 = vmatpush.bf16.msrb.mxu3 %v3662_v58  ;;  %v3611_v27 = vld [vmem:[%s6495_s1 + $0x730] sm:$0xf0]  ;;  %v4167_v29 = vld [vmem:[%s6495_s1 + $0x404] sm:$0xf]  ;;  %v3486_v32 = vor.u32 %v4235_v24, %v3483_v25  ;;  %v4166_v54 = vld [vmem:[%s6495_s1 + $0x3f4] sm:$0xf0]  ;;  %v3074_v58 = vor.u32 %v4134_v50, %v3073_v49 }
  0x75   :  { %1764 = vmatpush.bf16.msrb.mxu0 %v3262_v0  ;;  %v3211_v30 = vld [vmem:[%s6495_s1 + $0x410] sm:$0xf0]  ;;  %v4199_v33 = vld [vmem:[%s6495_s1 + $0x504] sm:$0xf]  ;;  %v3614_v36 = vor.u32 %v4267_v26, %v3611_v27  ;;  %v3202_v62 = vor.u32 %v4166_v54, %v3201_v53  ;;  %v3057_v0 = vld [vmem:[%s6495_s1 + $0x2c8] sm:$0xf] }
  0x76   :  { %v3339_v34 = vld [vmem:[%s6495_s1 + $0x510] sm:$0xf0]  ;;  %v4231_v35 = vld [vmem:[%s6495_s1 + $0x604] sm:$0xf]  ;;  %v3214_v47 = vor.u32 %v4167_v29, %v3211_v30  ;;  %v2913_v11 = vld [vmem:[%s6495_s1 + $0x1a8] sm:$0xf] }
  0x77   :  { %1777 = vmatpush.bf16.msrb.mxu1 %v3390_v1  ;;  %1790 = vmatpush.bf16.msrb.mxu2 %v3518_v2  ;;  %v3467_v37 = vld [vmem:[%s6495_s1 + $0x610] sm:$0xf0]  ;;  %v4263_v39 = vld [vmem:[%s6495_s1 + $0x704] sm:$0xf]  ;;  %v3342_v51 = vor.u32 %v4199_v33, %v3339_v34  ;;  %v4130_v1 = vld [vmem:[%s6495_s1 + $0x2d4] sm:$0xf0] }
  0x78   :  { %1803 = vmatpush.bf16.msrb.mxu3 %v3646_v8  ;;  %v3595_v40 = vld [vmem:[%s6495_s1 + $0x710] sm:$0xf0]  ;;  %v3470_v52 = vor.u32 %v4231_v35, %v3467_v37  ;;  %v3185_v2 = vld [vmem:[%s6495_s1 + $0x3c8] sm:$0xf]  ;;  %v3058_v8 = vor.u32 %v4130_v1, %v3057_v0  ;;  %v4094_v13 = vld [vmem:[%s6495_s1 + $0x1b4] sm:$0xf0] }
  0x79   :  { %1765 = vmatpush.bf16.msrb.mxu0 %v3246_v14  ;;  %v3598_v55 = vor.u32 %v4263_v39, %v3595_v40  ;;  %v3186_v12 = vor.u32 %v4162_v3, %v3185_v2  ;;  %v3041_v14 = vld [vmem:[%s6495_s1 + $0x2a8] sm:$0xf]  ;;  %v4158_v17 = vld [vmem:[%s6495_s1 + $0x3b4] sm:$0xf0]  ;;  %v2914_v19 = vor.u32 %v4094_v13, %v2913_v11 }
  0x7a   :  { %v2769_v23 = vld [vmem:[%s6495_s1 + $0x88] sm:$0xf]  ;;  %v4058_v24 = vld [vmem:[%s6495_s1 + $0x94] sm:$0xf0] }
  0x7b   :  { %1778 = vmatpush.bf16.msrb.mxu1 %v3374_v15  ;;  %1791 = vmatpush.bf16.msrb.mxu2 %v3502_v16  ;;  %v4126_v15 = vld [vmem:[%s6495_s1 + $0x2b4] sm:$0xf0]  ;;  %v3169_v16 = vld [vmem:[%s6495_s1 + $0x3a8] sm:$0xf] }
  0x7c   :  { %1804 = vmatpush.bf16.msrb.mxu3 %v3630_v22  ;;  %v3042_v22 = vor.u32 %v4126_v15, %v3041_v14  ;;  %v2897_v25 = vld [vmem:[%s6495_s1 + $0x188] sm:$0xf]  ;;  %v3170_v26 = vor.u32 %v4158_v17, %v3169_v16  ;;  %v4090_v27 = vld [vmem:[%s6495_s1 + $0x194] sm:$0xf0] }
  0x7d   :  { %1766 = vmatpush.bf16.msrb.mxu0 %v3230_v28  ;;  %v3025_v28 = vld [vmem:[%s6495_s1 + $0x288] sm:$0xf]  ;;  %v4122_v29 = vld [vmem:[%s6495_s1 + $0x294] sm:$0xf0]  ;;  %v2898_v33 = vor.u32 %v4090_v27, %v2897_v25 }
  0x7e   :  { %v3153_v30 = vld [vmem:[%s6495_s1 + $0x388] sm:$0xf]  ;;  %v3026_v34 = vor.u32 %v4122_v29, %v3025_v28  ;;  %v4086_v40 = vld [vmem:[%s6495_s1 + $0x174] sm:$0xf0] }
  0x7f   :  { %1779 = vmatpush.bf16.msrb.mxu1 %v3358_v31  ;;  %1792 = vmatpush.bf16.msrb.mxu2 %v3486_v32  ;;  %v4154_v31 = vld [vmem:[%s6495_s1 + $0x394] sm:$0xf0]  ;;  %v2770_v32 = vor.u32 %v4058_v24, %v2769_v23  ;;  %v2753_v35 = vld [vmem:[%s6495_s1 + $0x68] sm:$0xf] }
  0x80   :  { %1805 = vmatpush.bf16.msrb.mxu3 %v3614_v36  ;;  %v4054_v36 = vld [vmem:[%s6495_s1 + $0x74] sm:$0xf0]  ;;  %v2881_v37 = vld [vmem:[%s6495_s1 + $0x168] sm:$0xf]  ;;  %v3154_v39 = vor.u32 %v4154_v31, %v3153_v30 }
  0x81   :  { %1767 = vmatpush.bf16.msrb.mxu0 %v3214_v47  ;;  %v3009_v43 = vld [vmem:[%s6495_s1 + $0x268] sm:$0xf]  ;;  %v4118_v45 = vld [vmem:[%s6495_s1 + $0x274] sm:$0xf0]  ;;  %v2754_v48 = vor.u32 %v4054_v36, %v2753_v35  ;;  %v2882_v49 = vor.u32 %v4086_v40, %v2881_v37 }
  0x82   :  { %v3137_v46 = vld [vmem:[%s6495_s1 + $0x368] sm:$0xf]  ;;  %v4150_v47 = vld [vmem:[%s6495_s1 + $0x374] sm:$0xf0]  ;;  %v3010_v50 = vor.u32 %v4118_v45, %v3009_v43 }
  0x83   :  { %1780 = vmatpush.bf16.msrb.mxu1 %v3342_v51  ;;  %1793 = vmatpush.bf16.msrb.mxu2 %v3470_v52  ;;  %v2737_v51 = vld [vmem:[%s6495_s1 + $0x48] sm:$0xf]  ;;  %v4050_v52 = vld [vmem:[%s6495_s1 + $0x54] sm:$0xf0]  ;;  %v3138_v54 = vor.u32 %v4150_v47, %v3137_v46 }
  0x84   :  { %1806 = vmatpush.bf16.msrb.mxu3 %v3598_v55  ;;  %1768 = vmatmul.bf16.vlgmr.msrb.gmra.mxu0 %v4875_v41  ;;  %v2865_v53 = vld [vmem:[%s6495_s1 + $0x148] sm:$0xf]  ;;  %v4082_v55 = vld [vmem:[%s6495_s1 + $0x154] sm:$0xf0]  ;;  %v2738_v60 = vor.u32 %v4050_v52, %v2737_v51 }
  0x85   :  { %1812 = vmatpush.bf16.msra.mxu0 %v2818_v56  ;;  %v2993_v56 = vld [vmem:[%s6495_s1 + $0x248] sm:$0xf]  ;;  %v4146_v59 = vld [vmem:[%s6495_s1 + $0x354] sm:$0xf0]  ;;  %v2866_v61 = vor.u32 %v4082_v55, %v2865_v53 }
  0x86   :  { %1794 = vmatmul.bf16.vlgmr.msrb.gmra.mxu2 %v4867_v38  ;;  %1781 = vmatmul.bf16.vlgmr.msrb.gmra.mxu1 %v4879_v44  ;;  %v2721_v63 = vld [vmem:[%s6495_s1 + $0x28] sm:$0xf]  ;;  %v4046_v0 = vld [vmem:[%s6495_s1 + $0x34] sm:$0xf0] }
  0x87   :  { %1825 = vmatpush.bf16.msra.mxu1 %v2946_v57  ;;  %1838 = vmatpush.bf16.msra.mxu2 %v3074_v58  ;;  %v4114_v57 = vld [vmem:[%s6495_s1 + $0x254] sm:$0xf0]  ;;  %v3121_v58 = vld [vmem:[%s6495_s1 + $0x348] sm:$0xf]  ;;  %v2722_v10 = vor.u32 %v4046_v0, %v2721_v63 }
  0x88   :  { %1851 = vmatpush.bf16.msra.mxu3 %v3202_v62  ;;  %v2994_v62 = vor.u32 %v4114_v57, %v2993_v56  ;;  %v2849_v1 = vld [vmem:[%s6495_s1 + $0x128] sm:$0xf]  ;;  %v3122_v2 = vor.u32 %v4146_v59, %v3121_v58  ;;  %v4078_v3 = vld [vmem:[%s6495_s1 + $0x134] sm:$0xf0] }
  0x89   :  { %1807 = vmatmul.bf16.vlgmr.msrb.gmra.mxu3 %v4877_v42  ;;  %1813 = vmatpush.bf16.msra.mxu0 %v2802_v5  ;;  %v2977_v5 = vld [vmem:[%s6495_s1 + $0x228] sm:$0xf]  ;;  %v4142_v9 = vld [vmem:[%s6495_s1 + $0x334] sm:$0xf0]  ;;  %v2850_v13 = vor.u32 %v4078_v3, %v2849_v1 }
  0x8a   :  { %v2705_v11 = vld [vmem:[%s6495_s1 + $0x8] sm:$0xf]  ;;  %v4074_v16 = vld [vmem:[%s6495_s1 + $0x114] sm:$0xf0] }
  0x8b   :  { %1826 = vmatpush.bf16.msra.mxu1 %v2930_v7  ;;  %1839 = vmatpush.bf16.msra.mxu2 %v3058_v8  ;;  %v4110_v7 = vld [vmem:[%s6495_s1 + $0x234] sm:$0xf0]  ;;  %v3105_v8 = vld [vmem:[%s6495_s1 + $0x328] sm:$0xf] }
  0x8c   :  { %1852 = vmatpush.bf16.msra.mxu3 %v3186_v12  ;;  %v4042_v12 = vld [vmem:[%s6495_s1 + $0x14] sm:$0xf0]  ;;  %v2978_v14 = vor.u32 %v4110_v7, %v2977_v5  ;;  %v2833_v15 = vld [vmem:[%s6495_s1 + $0x108] sm:$0xf] }
  0x8d   :  { %1814 = vmatpush.bf16.msra.mxu0 %v2786_v18  ;;  %v2961_v17 = vld [vmem:[%s6495_s1 + $0x208] sm:$0xf]  ;;  %v3106_v18 = vor.u32 %v4142_v9, %v3105_v8  ;;  %v4138_v23 = vld [vmem:[%s6495_s1 + $0x314] sm:$0xf0]  ;;  %v2706_v27 = vor.u32 %v4042_v12, %v2705_v11  ;;  %v2834_v31 = vor.u32 %v4074_v16, %v2833_v15 }
  0x8e   :  { %v3329_v24 = vld [vmem:[%s6495_s1 + $0x4e8] sm:$0xf]  ;;  %v4198_v25 = vld [vmem:[%s6495_s1 + $0x4f4] sm:$0xf0] }
  0x8f   :  { %1827 = vmatpush.bf16.msra.mxu1 %v2914_v19  ;;  %1840 = vmatpush.bf16.msra.mxu2 %v3042_v22  ;;  %v4106_v19 = vld [vmem:[%s6495_s1 + $0x214] sm:$0xf0]  ;;  %v3089_v22 = vld [vmem:[%s6495_s1 + $0x308] sm:$0xf]  ;;  %v3330_v36 = vor.u32 %v4198_v25, %v3329_v24 }
  0x90   :  { %1853 = vmatpush.bf16.msra.mxu3 %v3170_v26  ;;  %v3457_v26 = vld [vmem:[%s6495_s1 + $0x5e8] sm:$0xf]  ;;  %v4230_v28 = vld [vmem:[%s6495_s1 + $0x5f4] sm:$0xf0]  ;;  %v3090_v35 = vor.u32 %v4138_v23, %v3089_v22  ;;  %v5533_v22 = vld [vmem:[%s6497_s2] sm:$0xf] }
  0x91   :  { %1815 = vmatpush.bf16.msra.mxu0 %v2770_v32  ;;  %v3585_v29 = vld [vmem:[%s6495_s1 + $0x6e8] sm:$0xf]  ;;  %v4262_v30 = vld [vmem:[%s6495_s1 + $0x6f4] sm:$0xf0]  ;;  %v2962_v32 = vor.u32 %v4106_v19, %v2961_v17  ;;  %v3458_v37 = vor.u32 %v4230_v28, %v3457_v26 }
  0x92   :  { %v3313_v40 = vld [vmem:[%s6495_s1 + $0x4c8] sm:$0xf]  ;;  %v4194_v43 = vld [vmem:[%s6495_s1 + $0x4d4] sm:$0xf0] }
  0x93   :  { %1828 = vmatpush.bf16.msra.mxu1 %v2898_v33  ;;  %1841 = vmatpush.bf16.msra.mxu2 %v3026_v34  ;;  %v3713_v33 = vld [vmem:[%s6495_s1 + $0x7e8] sm:$0xf]  ;;  %v4294_v34 = vld [vmem:[%s6495_s1 + $0x7f4] sm:$0xf0]  ;;  %v3314_v52 = vor.u32 %v4194_v43, %v3313_v40 }
  0x94   :  { %1854 = vmatpush.bf16.msra.mxu3 %v3154_v39  ;;  %v3586_v39 = vor.u32 %v4262_v30, %v3585_v29  ;;  %v3441_v45 = vld [vmem:[%s6495_s1 + $0x5c8] sm:$0xf]  ;;  %v3714_v46 = vor.u32 %v4294_v34, %v3713_v33  ;;  %v4226_v47 = vld [vmem:[%s6495_s1 + $0x5d4] sm:$0xf0]  ;;  %v288_v30 = vperm.slane %v5533_v22, 0 }
  0x95   :  { %1816 = vmatpush.bf16.msra.mxu0 %v2754_v48  ;;  %v3569_v48 = vld [vmem:[%s6495_s1 + $0x6c8] sm:$0xf]  ;;  %v4290_v51 = vld [vmem:[%s6495_s1 + $0x7d4] sm:$0xf0]  ;;  %v3442_v53 = vor.u32 %v4226_v47, %v3441_v45 }
  0x96   :  { %v3297_v55 = vld [vmem:[%s6495_s1 + $0x4a8] sm:$0xf]  ;;  %v4190_v56 = vld [vmem:[%s6495_s1 + $0x4b4] sm:$0xf0] }
  0x97   :  { %1829 = vmatpush.bf16.msra.mxu1 %v2882_v49  ;;  %1842 = vmatpush.bf16.msra.mxu2 %v3010_v50  ;;  %v4258_v49 = vld [vmem:[%s6495_s1 + $0x6d4] sm:$0xf0]  ;;  %v3697_v50 = vld [vmem:[%s6495_s1 + $0x7c8] sm:$0xf]  ;;  %v3298_v0 = vor.u32 %v4190_v56, %v3297_v55 }
  0x98   :  { %1855 = vmatpush.bf16.msra.mxu3 %v3138_v54  ;;  %v3570_v54 = vor.u32 %v4258_v49, %v3569_v48  ;;  %v3425_v57 = vld [vmem:[%s6495_s1 + $0x5a8] sm:$0xf]  ;;  %v3698_v58 = vor.u32 %v4290_v51, %v3697_v50  ;;  %v4222_v59 = vld [vmem:[%s6495_s1 + $0x5b4] sm:$0xf0] }
  0x99   :  { %1817 = vmatpush.bf16.msra.mxu0 %v2738_v60  ;;  %v3553_v60 = vld [vmem:[%s6495_s1 + $0x6a8] sm:$0xf]  ;;  %v4286_v63 = vld [vmem:[%s6495_s1 + $0x7b4] sm:$0xf0]  ;;  %v3426_v1 = vor.u32 %v4222_v59, %v3425_v57 }
  0x9a   :  { %v3281_v3 = vld [vmem:[%s6495_s1 + $0x488] sm:$0xf]  ;;  %v4186_v5 = vld [vmem:[%s6495_s1 + $0x494] sm:$0xf0] }
  0x9b   :  { %1830 = vmatpush.bf16.msra.mxu1 %v2866_v61  ;;  %1843 = vmatpush.bf16.msra.mxu2 %v2994_v62  ;;  %v4254_v61 = vld [vmem:[%s6495_s1 + $0x6b4] sm:$0xf0]  ;;  %v3681_v62 = vld [vmem:[%s6495_s1 + $0x7a8] sm:$0xf] }
  0x9c   :  { %1856 = vmatpush.bf16.msra.mxu3 %v3122_v2  ;;  %v3554_v2 = vor.u32 %v4254_v61, %v3553_v60  ;;  %v3409_v7 = vld [vmem:[%s6495_s1 + $0x588] sm:$0xf]  ;;  %v3682_v8 = vor.u32 %v4286_v63, %v3681_v62  ;;  %v4218_v9 = vld [vmem:[%s6495_s1 + $0x594] sm:$0xf0] }
  0x9d   :  { %1818 = vmatpush.bf16.msra.mxu0 %v2722_v10  ;;  %v3537_v10 = vld [vmem:[%s6495_s1 + $0x688] sm:$0xf]  ;;  %v4250_v11 = vld [vmem:[%s6495_s1 + $0x694] sm:$0xf0]  ;;  %v3410_v16 = vor.u32 %v4218_v9, %v3409_v7 }
  0x9e   :  { %v3665_v12 = vld [vmem:[%s6495_s1 + $0x788] sm:$0xf]  ;;  %v3538_v17 = vor.u32 %v4250_v11, %v3537_v10  ;;  %v4214_v24 = vld [vmem:[%s6495_s1 + $0x574] sm:$0xf0] }
  0x9f   :  { %1831 = vmatpush.bf16.msra.mxu1 %v2850_v13  ;;  %1844 = vmatpush.bf16.msra.mxu2 %v2978_v14  ;;  %v4282_v13 = vld [vmem:[%s6495_s1 + $0x794] sm:$0xf0]  ;;  %v3282_v14 = vor.u32 %v4186_v5, %v3281_v3  ;;  %v3265_v15 = vld [vmem:[%s6495_s1 + $0x468] sm:$0xf] }
  0xa0   :  { %1857 = vmatpush.bf16.msra.mxu3 %v3106_v18  ;;  %v4182_v18 = vld [vmem:[%s6495_s1 + $0x474] sm:$0xf0]  ;;  %v3393_v19 = vld [vmem:[%s6495_s1 + $0x568] sm:$0xf]  ;;  %v3666_v23 = vor.u32 %v4282_v13, %v3665_v12 }
  0xa1   :  { %1819 = vmatpush.bf16.msra.mxu0 %v2706_v27  ;;  %v3521_v25 = vld [vmem:[%s6495_s1 + $0x668] sm:$0xf]  ;;  %v4246_v26 = vld [vmem:[%s6495_s1 + $0x674] sm:$0xf0]  ;;  %v3266_v29 = vor.u32 %v4182_v18, %v3265_v15  ;;  %v4100_v18 = vld [vmem:[%s6495_s1 + $0x1ec] sm:$0xf] }
  0xa2   :  { %v3649_v27 = vld [vmem:[%s6495_s1 + $0x768] sm:$0xf]  ;;  %v4278_v28 = vld [vmem:[%s6495_s1 + $0x774] sm:$0xf0] }
  0xa3   :  { %1832 = vmatpush.bf16.msra.mxu1 %v2834_v31  ;;  %1845 = vmatpush.bf16.msra.mxu2 %v2962_v32  ;;  %v3394_v31 = vor.u32 %v4214_v24, %v3393_v19  ;;  %v3522_v32 = vor.u32 %v4246_v26, %v3521_v25  ;;  %v3249_v33 = vld [vmem:[%s6495_s1 + $0x448] sm:$0xf]  ;;  %v4178_v34 = vld [vmem:[%s6495_s1 + $0x454] sm:$0xf0]  ;;  %v2947_v24 = vld [vmem:[%s6495_s1 + $0x1f8] sm:$0xf0] }
  0xa4   :  { %1858 = vmatpush.bf16.msra.mxu3 %v3090_v35  ;;  %1820 = vmatmul.bf16.vlgmr.msra.gmra.mxu0 %v4716_v20  ;;  %v3377_v35 = vld [vmem:[%s6495_s1 + $0x548] sm:$0xf]  ;;  %v4242_v40 = vld [vmem:[%s6495_s1 + $0x654] sm:$0xf0]  ;;  %v3250_v47 = vor.u32 %v4178_v34, %v3249_v33  ;;  %v4132_v25 = vld [vmem:[%s6495_s1 + $0x2ec] sm:$0xf] }
  0xa5   :  { %1864 = vmatpush.bf16.msrb.mxu0 %v3330_v36  ;;  %v3650_v36 = vor.u32 %v4278_v28, %v3649_v27  ;;  %v3633_v43 = vld [vmem:[%s6495_s1 + $0x748] sm:$0xf]  ;;  %v4274_v45 = vld [vmem:[%s6495_s1 + $0x754] sm:$0xf0]  ;;  %v3075_v26 = vld [vmem:[%s6495_s1 + $0x2f8] sm:$0xf0] }
  0xa6   :  { %1846 = vmatmul.bf16.vlgmr.msra.gmra.mxu2 %v4684_v4  ;;  %1833 = vmatmul.bf16.vlgmr.msra.gmra.mxu1 %v4719_v21  ;;  %v3634_v56 = vor.u32 %v4274_v45, %v3633_v43  ;;  %v4206_v57 = vld [vmem:[%s6495_s1 + $0x534] sm:$0xf0]  ;;  %v3617_v62 = vld [vmem:[%s6495_s1 + $0x728] sm:$0xf]  ;;  %v4096_v43 = vld [vmem:[%s6495_s1 + $0x1cc] sm:$0xf] }
  0xa7   :  { %1877 = vmatpush.bf16.msrb.mxu1 %v3458_v37  ;;  %1890 = vmatpush.bf16.msrb.mxu2 %v3586_v39  ;;  %v4210_v37 = vld [vmem:[%s6495_s1 + $0x554] sm:$0xf0]  ;;  %v3505_v39 = vld [vmem:[%s6495_s1 + $0x648] sm:$0xf] }
  0xa8   :  { %1903 = vmatpush.bf16.msrb.mxu3 %v3714_v46  ;;  %v3378_v50 = vor.u32 %v4210_v37, %v3377_v35  ;;  %v3506_v51 = vor.u32 %v4242_v40, %v3505_v39  ;;  %v1639_v55 = vpop.f32.mrf.mxu2  ;;  %v4238_v59 = vld [vmem:[%s6495_s1 + $0x634] sm:$0xf0]  ;;  %v3473_v10 = vld [vmem:[%s6495_s1 + $0x608] sm:$0xf]  ;;  %v3078_v37 = vor.u32 %v4132_v25, %v3075_v26  ;;  %v4064_v39 = vld [vmem:[%s6495_s1 + $0xcc] sm:$0xf] }
  0xa9   :  { %1859 = vmatmul.bf16.vlgmr.msra.gmra.mxu3 %v4689_v6  ;;  %1865 = vmatpush.bf16.msrb.mxu0 %v3314_v52  ;;  %v3233_v52 = vld [vmem:[%s6495_s1 + $0x428] sm:$0xf]  ;;  %v1652_v61 = vpop.f32.mrf.mxu3  ;;  %v4270_v63 = vld [vmem:[%s6495_s1 + $0x734] sm:$0xf0]  ;;  %v2803_v40 = vld [vmem:[%s6495_s1 + $0xd8] sm:$0xf0] }
  0xaa   :  { %v4202_v9 = vld [vmem:[%s6495_s1 + $0x514] sm:$0xf0]  ;;  %v3618_v11 = vor.u32 %v4270_v63, %v3617_v62  ;;  %v3601_v13 = vld [vmem:[%s6495_s1 + $0x708] sm:$0xf]  ;;  %v3171_v62 = vld [vmem:[%s6495_s1 + $0x3b8] sm:$0xf0] }
  0xab   :  { %1878 = vmatpush.bf16.msrb.mxu1 %v3442_v53  ;;  %1891 = vmatpush.bf16.msrb.mxu2 %v3570_v54  ;;  %v4174_v53 = vld [vmem:[%s6495_s1 + $0x434] sm:$0xf0]  ;;  %v3361_v54 = vld [vmem:[%s6495_s1 + $0x528] sm:$0xf] }
  0xac   :  { %1904 = vmatpush.bf16.msrb.mxu3 %v3698_v58  ;;  %v3489_v58 = vld [vmem:[%s6495_s1 + $0x628] sm:$0xf]  ;;  %v3362_v5 = vor.u32 %v4206_v57, %v3361_v54  ;;  %v4234_v12 = vld [vmem:[%s6495_s1 + $0x614] sm:$0xf0]  ;;  %v4060_v54 = vld [vmem:[%s6495_s1 + $0xac] sm:$0xf] }
  0xad   :  { %1866 = vmatpush.bf16.msrb.mxu0 %v3298_v0  ;;  %v3234_v0 = vor.u32 %v4174_v53, %v3233_v52  ;;  %v3490_v7 = vor.u32 %v4238_v59, %v3489_v58  ;;  %v2915_v58 = vld [vmem:[%s6495_s1 + $0x1b8] sm:$0xf0]  ;;  %v4124_v59 = vld [vmem:[%s6495_s1 + $0x2ac] sm:$0xf] }
  0xaf   :  { %1879 = vmatpush.bf16.msrb.mxu1 %v3426_v1  ;;  %1892 = vmatpush.bf16.msrb.mxu2 %v3554_v2  ;;  %v1613_v46 = vpop.f32.mrf.mxu0  ;;  %v1626_v49 = vpop.f32.mrf.mxu1  ;;  %v3217_v1 = vld [vmem:[%s6495_s1 + $0x408] sm:$0xf]  ;;  %v4170_v2 = vld [vmem:[%s6495_s1 + $0x414] sm:$0xf0] }
  0xb0   :  { %1905 = vmatpush.bf16.msrb.mxu3 %v3682_v8  ;;  %v1614_v48 = vadd.f32 %v1613_v46, %v288_v30  ;;  %v3345_v8 = vld [vmem:[%s6495_s1 + $0x508] sm:$0xf]  ;;  %v4164_v30 = vld [vmem:[%s6495_s1 + $0x3ec] sm:$0xf]  ;;  %v2931_v46 = vld [vmem:[%s6495_s1 + $0x1d8] sm:$0xf0] }
  0xb1   :  { %1867 = vmatpush.bf16.msrb.mxu0 %v3282_v14  ;;  %v4266_v14 = vld [vmem:[%s6495_s1 + $0x714] sm:$0xf0]  ;;  %v3346_v28 = vor.u32 %v4202_v9, %v3345_v8  ;;  %v1654_v35 = vpop.f32.mrf.mxu3  ;;  %v2934_v52 = vor.u32 %v4096_v43, %v2931_v46  ;;  %v2899_v8 = vld [vmem:[%s6495_s1 + $0x198] sm:$0xf0]  ;;  %v4120_v9 = vld [vmem:[%s6495_s1 + $0x28c] sm:$0xf] }
  0xb2   :  { %v1627_v60 = vadd.f32 %v1626_v49, %v1614_v48  ;;  %v3602_v33 = vor.u32 %v4266_v14, %v3601_v13  ;;  %v3059_v48 = vld [vmem:[%s6495_s1 + $0x2d8] sm:$0xf0]  ;;  %v4160_v49 = vld [vmem:[%s6495_s1 + $0x3cc] sm:$0xf] }
  0xb3   :  { %1880 = vmatpush.bf16.msrb.mxu1 %v3410_v16  ;;  %1893 = vmatpush.bf16.msrb.mxu2 %v3538_v17  ;;  %v4068_v16 = vld [vmem:[%s6495_s1 + $0xec] sm:$0xf]  ;;  %v2819_v17 = vld [vmem:[%s6495_s1 + $0xf8] sm:$0xf0] }
  0xb4   :  { %1906 = vmatpush.bf16.msrb.mxu3 %v3666_v23  ;;  %v1640_v3 = vadd.f32 %v1639_v55, %v1627_v60  ;;  %v3218_v23 = vor.u32 %v4170_v2, %v3217_v1  ;;  %v2822_v34 = vor.u32 %v4068_v16, %v2819_v17  ;;  %v2787_v55 = vld [vmem:[%s6495_s1 + $0xb8] sm:$0xf0]  ;;  %v4056_v2 = vld [vmem:[%s6495_s1 + $0x8c] sm:$0xf] }
  0xb5   :  { %1868 = vmatpush.bf16.msrb.mxu0 %v3266_v29  ;;  %v3474_v29 = vor.u32 %v4234_v12, %v3473_v10  ;;  %v3043_v60 = vld [vmem:[%s6495_s1 + $0x2b8] sm:$0xf0]  ;;  %v2790_v63 = vor.u32 %v4060_v54, %v2787_v55  ;;  %v4048_v35 = vld [vmem:[%s6495_s1 + $0x4c] sm:$0xf] }
  0xb6   :  { %v5623_v15 = vadd.f32 %v1652_v61, %v1640_v3  ;;  %v4156_v61 = vld [vmem:[%s6495_s1 + $0x3ac] sm:$0xf]  ;;  %v3046_v1 = vor.u32 %v4124_v59, %v3043_v60  ;;  %v2771_v3 = vld [vmem:[%s6495_s1 + $0x98] sm:$0xf0] }
  0xb7   :  { %1881 = vmatpush.bf16.msrb.mxu1 %v3394_v31  ;;  %1894 = vmatpush.bf16.msrb.mxu2 %v3522_v32  ;;  %v1615_v19 = vpop.f32.mrf.mxu0  ;;  %v1628_v27 = vpop.f32.mrf.mxu1  ;;  %v3203_v31 = vld [vmem:[%s6495_s1 + $0x3f8] sm:$0xf0]  ;;  %v2774_v13 = vor.u32 %v4056_v2, %v2771_v3  ;;  %v4040_v3 = vld [vmem:[%s6495_s1 + $0xc] sm:$0xf] }
  0xb8   :  { %1907 = vmatpush.bf16.msrb.mxu3 %v3650_v36  ;;  %v1641_v32 = vpop.f32.mrf.mxu2  ;;  %v2950_v36 = vor.u32 %v4100_v18, %v2947_v24  ;;  %v3206_v45 = vor.u32 %v4164_v30, %v3203_v31  ;;  %v3027_v10 = vld [vmem:[%s6495_s1 + $0x298] sm:$0xf0]  ;;  %v4052_v18 = vld [vmem:[%s6495_s1 + $0x6c] sm:$0xf] }
  0xb9   :  { %1869 = vmatpush.bf16.msrb.mxu0 %v3250_v47  ;;  %v4128_v47 = vld [vmem:[%s6495_s1 + $0x2cc] sm:$0xf]  ;;  %v3155_v12 = vld [vmem:[%s6495_s1 + $0x398] sm:$0xf0]  ;;  %v3030_v17 = vor.u32 %v4120_v9, %v3027_v10 }
  0xba   :  { %v3062_v53 = vor.u32 %v4128_v47, %v3059_v48  ;;  %v2755_v19 = vld [vmem:[%s6495_s1 + $0x78] sm:$0xf0]  ;;  %v4148_v30 = vld [vmem:[%s6495_s1 + $0x36c] sm:$0xf] }
  0xbb   :  { %1882 = vmatpush.bf16.msrb.mxu1 %v3378_v50  ;;  %1895 = vmatpush.bf16.msrb.mxu2 %v3506_v51  ;;  %v3187_v50 = vld [vmem:[%s6495_s1 + $0x3d8] sm:$0xf0]  ;;  %v2806_v51 = vor.u32 %v4064_v39, %v2803_v40  ;;  %v2758_v32 = vor.u32 %v4052_v18, %v2755_v19  ;;  %v4072_v9 = vld [vmem:[%s6495_s1 + $0x10c] sm:$0xf] }
  0xbc   :  { %1908 = vmatpush.bf16.msrb.mxu3 %v3634_v56  ;;  %v4092_v56 = vld [vmem:[%s6495_s1 + $0x1ac] sm:$0xf]  ;;  %v3190_v57 = vor.u32 %v4160_v49, %v3187_v50  ;;  %v2883_v27 = vld [vmem:[%s6495_s1 + $0x178] sm:$0xf0] }
  0xbd   :  { %1870 = vmatpush.bf16.msrb.mxu0 %v3234_v0  ;;  %v2918_v0 = vor.u32 %v4092_v56, %v2915_v58  ;;  %v2867_v43 = vld [vmem:[%s6495_s1 + $0x158] sm:$0xf0]  ;;  %v4144_v49 = vld [vmem:[%s6495_s1 + $0x34c] sm:$0xf] }
  0xbe   :  { %v2995_v46 = vld [vmem:[%s6495_s1 + $0x258] sm:$0xf0]  ;;  %v4044_v56 = vld [vmem:[%s6495_s1 + $0x2c] sm:$0xf] }
  0xbf   :  { %1883 = vmatpush.bf16.msrb.mxu1 %v3362_v5  ;;  %1896 = vmatpush.bf16.msrb.mxu2 %v3490_v7  ;;  %v4088_v5 = vld [vmem:[%s6495_s1 + $0x18c] sm:$0xf]  ;;  %v3174_v7 = vor.u32 %v4156_v61, %v3171_v62  ;;  %v3123_v50 = vld [vmem:[%s6495_s1 + $0x358] sm:$0xf0] }
  0xc0   :  { %1909 = vmatpush.bf16.msrb.mxu3 %v3618_v11  ;;  %v4152_v11 = vld [vmem:[%s6495_s1 + $0x38c] sm:$0xf]  ;;  %v2902_v16 = vor.u32 %v4088_v5, %v2899_v8  ;;  %v3126_v60 = vor.u32 %v4144_v49, %v3123_v50  ;;  %v2851_v61 = vld [vmem:[%s6495_s1 + $0x138] sm:$0xf0] }
  0xc1   :  { %1871 = vmatpush.bf16.msrb.mxu0 %v3218_v23  ;;  %v4084_v23 = vld [vmem:[%s6495_s1 + $0x16c] sm:$0xf]  ;;  %v3158_v26 = vor.u32 %v4152_v11, %v3155_v12  ;;  %v2707_v5 = vld [vmem:[%s6495_s1 + $0x18] sm:$0xf0] }
  0xc2   :  { %v4076_v58 = vld [vmem:[%s6495_s1 + $0x12c] sm:$0xf]  ;;  %v2835_v10 = vld [vmem:[%s6495_s1 + $0x118] sm:$0xf0] }
  0xc3   :  { %1884 = vmatpush.bf16.msrb.mxu1 %v3346_v28  ;;  %1897 = vmatpush.bf16.msrb.mxu2 %v3474_v29  ;;  %v1665_v14 = vpop.f32.mrf.mxu0  ;;  %v4116_v28 = vld [vmem:[%s6495_s1 + $0x26c] sm:$0xf]  ;;  %v3011_v29 = vld [vmem:[%s6495_s1 + $0x278] sm:$0xf0] }
  0xc4   :  { %1910 = vmatpush.bf16.msrb.mxu3 %v3602_v33  ;;  %1872 = vmatmul.bf16.vlgmr.msrb.gmra.mxu0 %v4875_v41  ;;  %v1666_v24 = vadd.f32 %v1665_v14, %v5623_v15  ;;  %v3139_v15 = vld [vmem:[%s6495_s1 + $0x378] sm:$0xf0]  ;;  %v2886_v33 = vor.u32 %v4084_v23, %v2883_v27  ;;  %v4108_v62 = vld [vmem:[%s6495_s1 + $0x22c] sm:$0xf] }
  0xc5   :  { %1916 = vmatpush.bf16.msra.mxu0 %v2822_v34  ;;  %v1678_v25 = vpop.f32.mrf.mxu1  ;;  %v3014_v34 = vor.u32 %v4116_v28, %v3011_v29  ;;  %v3142_v40 = vor.u32 %v4148_v30, %v3139_v15  ;;  %v4104_v11 = vld [vmem:[%s6495_s1 + $0x20c] sm:$0xf]  ;;  %v2963_v14 = vld [vmem:[%s6495_s1 + $0x218] sm:$0xf0]  ;;  %v2838_v29 = vor.u32 %v4072_v9, %v2835_v10 }
  0xc6   :  { %1898 = vmatmul.bf16.vlgmr.msrb.gmra.mxu2 %v4867_v38  ;;  %1885 = vmatmul.bf16.vlgmr.msrb.gmra.mxu1 %v4879_v44  ;;  %v1679_v31 = vadd.f32 %v1678_v25, %v1666_v24  ;;  %v4196_v19 = vld [vmem:[%s6495_s1 + $0x4ec] sm:$0xf]  ;;  %v3331_v23 = vld [vmem:[%s6495_s1 + $0x4f8] sm:$0xf0]  ;;  %v2710_v25 = vor.u32 %v4040_v3, %v2707_v5  ;;  %v2966_v30 = vor.u32 %v4104_v11, %v2963_v14 }
  0xc7   :  { %1929 = vmatpush.bf16.msra.mxu1 %v2950_v36  ;;  %1942 = vmatpush.bf16.msra.mxu2 %v3078_v37  ;;  %v2739_v36 = vld [vmem:[%s6495_s1 + $0x58] sm:$0xf0]  ;;  %v4080_v37 = vld [vmem:[%s6495_s1 + $0x14c] sm:$0xf] }
  0xc8   :  { %1955 = vmatpush.bf16.msra.mxu3 %v3206_v45  ;;  %v4112_v45 = vld [vmem:[%s6495_s1 + $0x24c] sm:$0xf]  ;;  %v2870_v54 = vor.u32 %v4080_v37, %v2867_v43  ;;  %v3587_v28 = vld [vmem:[%s6495_s1 + $0x6f8] sm:$0xf0] }
  0xc9   :  { %1911 = vmatmul.bf16.vlgmr.msrb.gmra.mxu3 %v4877_v42  ;;  %1917 = vmatpush.bf16.msra.mxu0 %v2806_v51  ;;  %v1691_v39 = vpop.f32.mrf.mxu2  ;;  %v2742_v51 = vor.u32 %v4048_v35, %v2739_v36  ;;  %v2998_v55 = vor.u32 %v4112_v45, %v2995_v46  ;;  %v4228_v24 = vld [vmem:[%s6495_s1 + $0x5ec] sm:$0xf]  ;;  %v3315_v37 = vld [vmem:[%s6495_s1 + $0x4d8] sm:$0xf0] }
  0xca   :  { %v1692_v47 = vadd.f32 %v1691_v39, %v1679_v31  ;;  %v4260_v27 = vld [vmem:[%s6495_s1 + $0x6ec] sm:$0xf]  ;;  %v3715_v31 = vld [vmem:[%s6495_s1 + $0x7f8] sm:$0xf0] }
  0xcb   :  { %1930 = vmatpush.bf16.msra.mxu1 %v2934_v52  ;;  %1943 = vmatpush.bf16.msra.mxu2 %v3062_v53  ;;  %v1667_v53 = vpop.f32.mrf.mxu0  ;;  %v4292_v15 = vld [vmem:[%s6495_s1 + $0x7ec] sm:$0xf]  ;;  %v3590_v35 = vor.u32 %v4260_v27, %v3587_v28  ;;  %v3443_v43 = vld [vmem:[%s6495_s1 + $0x5d8] sm:$0xf0] }
  0xcc   :  { %1956 = vmatpush.bf16.msra.mxu3 %v3190_v57  ;;  %v1704_v48 = vpop.f32.mrf.mxu3  ;;  %v2723_v57 = vld [vmem:[%s6495_s1 + $0x38] sm:$0xf0]  ;;  %v4192_v36 = vld [vmem:[%s6495_s1 + $0x4cc] sm:$0xf] }
  0xcd   :  { %1918 = vmatpush.bf16.msra.mxu0 %v2790_v63  ;;  %v5774_v52 = vadd.f32 %v1704_v48, %v1692_v47  ;;  %v1680_v59 = vpop.f32.mrf.mxu1  ;;  %v2979_v63 = vld [vmem:[%s6495_s1 + $0x238] sm:$0xf0]  ;;  %v2726_v2 = vor.u32 %v4044_v56, %v2723_v57  ;;  %v4224_v39 = vld [vmem:[%s6495_s1 + $0x5cc] sm:$0xf]  ;;  %v3318_v49 = vor.u32 %v4192_v36, %v3315_v37 }
  0xce   :  { %v2982_v8 = vor.u32 %v4108_v62, %v2979_v63  ;;  %v4256_v45 = vld [vmem:[%s6495_s1 + $0x6cc] sm:$0xf]  ;;  %v3571_v46 = vld [vmem:[%s6495_s1 + $0x6d8] sm:$0xf0]  ;;  %v3446_v50 = vor.u32 %v4224_v39, %v3443_v43 }
  0xcf   :  { %1931 = vmatpush.bf16.msra.mxu1 %v2918_v0  ;;  %1944 = vmatpush.bf16.msra.mxu2 %v3046_v1  ;;  %v4140_v0 = vld [vmem:[%s6495_s1 + $0x32c] sm:$0xf]  ;;  %v3107_v1 = vld [vmem:[%s6495_s1 + $0x338] sm:$0xf0] }
  0xd0   :  { %1957 = vmatpush.bf16.msra.mxu3 %v3174_v7  ;;  %v2854_v7 = vor.u32 %v4076_v58, %v2851_v61  ;;  %v4288_v47 = vld [vmem:[%s6495_s1 + $0x7cc] sm:$0xf]  ;;  %v3699_v48 = vld [vmem:[%s6495_s1 + $0x7d8] sm:$0xf0] }
  0xd1   :  { %1919 = vmatpush.bf16.msra.mxu0 %v2774_v13  ;;  %v1693_v12 = vpop.f32.mrf.mxu2  ;;  %v3110_v13 = vor.u32 %v4140_v0, %v3107_v1  ;;  %v4188_v53 = vld [vmem:[%s6495_s1 + $0x4ac] sm:$0xf]  ;;  %v3702_v56 = vor.u32 %v4288_v47, %v3699_v48  ;;  %v3427_v57 = vld [vmem:[%s6495_s1 + $0x5b8] sm:$0xf0] }
  0xd2   :  { %v4252_v58 = vld [vmem:[%s6495_s1 + $0x6ac] sm:$0xf]  ;;  %v3555_v59 = vld [vmem:[%s6495_s1 + $0x6b8] sm:$0xf0] }
  0xd3   :  { %1932 = vmatpush.bf16.msra.mxu1 %v2902_v16  ;;  %1945 = vmatpush.bf16.msra.mxu2 %v3030_v17  ;;  %v4136_v16 = vld [vmem:[%s6495_s1 + $0x30c] sm:$0xf]  ;;  %v3091_v17 = vld [vmem:[%s6495_s1 + $0x318] sm:$0xf0]  ;;  %v3558_v63 = vor.u32 %v4252_v58, %v3555_v59  ;;  %v289_v58 = vperm.slane %v5533_v22, 1 }
  0xd4   :  { %1958 = vmatpush.bf16.msra.mxu3 %v3158_v26  ;;  %v1706_v18 = vpop.f32.mrf.mxu3  ;;  %v3459_v26 = vld [vmem:[%s6495_s1 + $0x5f8] sm:$0xf0]  ;;  %v4184_v0 = vld [vmem:[%s6495_s1 + $0x48c] sm:$0xf] }
  0xd5   :  { %1920 = vmatpush.bf16.msra.mxu0 %v2758_v32  ;;  %v3094_v32 = vor.u32 %v4136_v16, %v3091_v17  ;;  %v3283_v1 = vld [vmem:[%s6495_s1 + $0x498] sm:$0xf0]  ;;  %v4280_v5 = vld [vmem:[%s6495_s1 + $0x78c] sm:$0xf] }
  0xd6   :  { %v3539_v3 = vld [vmem:[%s6495_s1 + $0x698] sm:$0xf0]  ;;  %v4180_v12 = vld [vmem:[%s6495_s1 + $0x46c] sm:$0xf] }
  0xd7   :  { %1933 = vmatpush.bf16.msra.mxu1 %v2886_v33  ;;  %1946 = vmatpush.bf16.msra.mxu2 %v3014_v34  ;;  %v3334_v33 = vor.u32 %v4196_v19, %v3331_v23  ;;  %v3462_v34 = vor.u32 %v4228_v24, %v3459_v26  ;;  %v4212_v14 = vld [vmem:[%s6495_s1 + $0x56c] sm:$0xf]  ;;  %v3395_v18 = vld [vmem:[%s6495_s1 + $0x578] sm:$0xf0] }
  0xd8   :  { %1959 = vmatpush.bf16.msra.mxu3 %v3142_v40  ;;  %v3718_v40 = vor.u32 %v4292_v15, %v3715_v31  ;;  %v4244_v19 = vld [vmem:[%s6495_s1 + $0x66c] sm:$0xf]  ;;  %v3523_v23 = vld [vmem:[%s6495_s1 + $0x678] sm:$0xf0]  ;;  %v3398_v27 = vor.u32 %v4212_v14, %v3395_v18 }
  0xd9   :  { %1921 = vmatpush.bf16.msra.mxu0 %v2742_v51  ;;  %v3574_v51 = vor.u32 %v4256_v45, %v3571_v46  ;;  %v4276_v24 = vld [vmem:[%s6495_s1 + $0x76c] sm:$0xf]  ;;  %v3526_v28 = vor.u32 %v4244_v19, %v3523_v23  ;;  %v3635_v39 = vld [vmem:[%s6495_s1 + $0x758] sm:$0xf0]  ;;  %v3769_v23 = vld [vmem:[%s6498_s3 + $0x60] sm:$0xf] }
  0xda   :  { %v4208_v15 = vld [vmem:[%s6495_s1 + $0x54c] sm:$0xf]  ;;  %v3235_v48 = vld [vmem:[%s6495_s1 + $0x438] sm:$0xf0] }
  0xdb   :  { %1934 = vmatpush.bf16.msra.mxu1 %v2870_v54  ;;  %1947 = vmatpush.bf16.msra.mxu2 %v2998_v55  ;;  %v3299_v54 = vld [vmem:[%s6495_s1 + $0x4b8] sm:$0xf0]  ;;  %v4220_v55 = vld [vmem:[%s6495_s1 + $0x5ac] sm:$0xf] }
  0xdc   :  { %1960 = vmatpush.bf16.msra.mxu3 %v3126_v60  ;;  %v4284_v60 = vld [vmem:[%s6495_s1 + $0x7ac] sm:$0xf]  ;;  %v3302_v61 = vor.u32 %v4188_v53, %v3299_v54  ;;  %v3430_v62 = vor.u32 %v4220_v55, %v3427_v57  ;;  %v3363_v53 = vld [vmem:[%s6495_s1 + $0x538] sm:$0xf0] }
  0xdd   :  { %1922 = vmatpush.bf16.msra.mxu0 %v2726_v2  ;;  %v4248_v2 = vld [vmem:[%s6495_s1 + $0x68c] sm:$0xf]  ;;  %v3491_v55 = vld [vmem:[%s6495_s1 + $0x638] sm:$0xf0] }
  0xde   :  { %v3542_v11 = vor.u32 %v4248_v2, %v3539_v3  ;;  %v4272_v37 = vld [vmem:[%s6495_s1 + $0x74c] sm:$0xf]  ;;  %v3619_v57 = vld [vmem:[%s6495_s1 + $0x738] sm:$0xf0] }
  0xdf   :  { %1935 = vmatpush.bf16.msra.mxu1 %v2854_v7  ;;  %1948 = vmatpush.bf16.msra.mxu2 %v2982_v8  ;;  %v3667_v7 = vld [vmem:[%s6495_s1 + $0x798] sm:$0xf0]  ;;  %v3286_v8 = vor.u32 %v4184_v0, %v3283_v1  ;;  %v4172_v47 = vld [vmem:[%s6495_s1 + $0x42c] sm:$0xf] }
  0xe0   :  { %1961 = vmatpush.bf16.msra.mxu3 %v3110_v13  ;;  %v3267_v13 = vld [vmem:[%s6495_s1 + $0x478] sm:$0xf0]  ;;  %v3670_v17 = vor.u32 %v4280_v5, %v3667_v7  ;;  %v4236_v54 = vld [vmem:[%s6495_s1 + $0x62c] sm:$0xf]  ;;  %v3238_v59 = vor.u32 %v4172_v47, %v3235_v48  ;;  %v3777_v7 = vld [vmem:[%s6498_s3 + $0x70] sm:$0xf] }
  0xe1   :  { %1923 = vmatpush.bf16.msra.mxu0 %v2710_v25  ;;  %v5924_v9 = vpop.f32.mrf.mxu0  ;;  %v3651_v25 = vld [vmem:[%s6495_s1 + $0x778] sm:$0xf0]  ;;  %v3270_v26 = vor.u32 %v4180_v12, %v3267_v13  ;;  %v4326_v12 = vld [vmem:[%s6498_s3 + $0xf4] sm:$0xf0] }
  0xe2   :  { %v3347_v22 = vld [vmem:[%s6495_s1 + $0x518] sm:$0xf0]  ;;  %v1718_v5 = vadd.f32 %v5924_v9, %v289_v58  ;;  %v3737_v58 = vld [vmem:[%s6498_s3 + $0x20] sm:$0xf] }
  0xe3   :  { %1936 = vmatpush.bf16.msra.mxu1 %v2838_v29  ;;  %1949 = vmatpush.bf16.msra.mxu2 %v2966_v30  ;;  %v5935_v16 = vpop.f32.mrf.mxu1  ;;  %v4176_v29 = vld [vmem:[%s6495_s1 + $0x44c] sm:$0xf]  ;;  %v3251_v30 = vld [vmem:[%s6495_s1 + $0x458] sm:$0xf0] }
  0xe4   :  { %1962 = vmatpush.bf16.msra.mxu3 %v3094_v32  ;;  %1924 = vmatmul.bf16.vlgmr.msra.gmra.mxu0 %v4716_v20  ;;  %v3654_v32 = vor.u32 %v4276_v24, %v3651_v25  ;;  %v3603_v3 = vld [vmem:[%s6495_s1 + $0x718] sm:$0xf0]  ;;  %v1731_v19 = vadd.f32 %v5935_v16, %v1718_v5  ;;  %v4308_v24 = vld [vmem:[%s6498_s3 + $0x64] sm:$0xf0]  ;;  %v3833_v25 = vld [vmem:[%s6498_s3 + $0xe0] sm:$0xf] }
  0xe5   :  { %1968 = vmatpush.bf16.msrb.mxu0 %v3334_v33  ;;  %v3379_v33 = vld [vmem:[%s6495_s1 + $0x558] sm:$0xf0]  ;;  %v3770_v16 = vor.u32 %v4308_v24, %v3769_v23  ;;  %v3785_v23 = vld [vmem:[%s6498_s3 + $0x80] sm:$0xf] }
  0xe6   :  { %1950 = vmatmul.bf16.vlgmr.msra.gmra.mxu2 %v4684_v4  ;;  %v3683_v4 = vld [vmem:[%s6495_s1 + $0x7b8] sm:$0xf0]  ;;  %1937 = vmatmul.bf16.vlgmr.msra.gmra.mxu1 %v4719_v21  ;;  %v3382_v45 = vor.u32 %v4208_v15, %v3379_v33  ;;  %v3825_v15 = vld [vmem:[%s6498_s3 + $0xd0] sm:$0xf] }
  0xe7   :  { %1981 = vmatpush.bf16.msrb.mxu1 %v3462_v34  ;;  %1994 = vmatpush.bf16.msrb.mxu2 %v3590_v35  ;;  %v3686_v20 = vor.u32 %v4284_v60, %v3683_v4  ;;  %v3411_v21 = vld [vmem:[%s6495_s1 + $0x598] sm:$0xf0]  ;;  %v4240_v34 = vld [vmem:[%s6495_s1 + $0x64c] sm:$0xf] }
  0xe8   :  { %2007 = vmatpush.bf16.msrb.mxu3 %v3718_v40  ;;  %v3507_v35 = vld [vmem:[%s6495_s1 + $0x658] sm:$0xf0]  ;;  %v3254_v40 = vor.u32 %v4176_v29, %v3251_v30  ;;  %v4168_v60 = vld [vmem:[%s6495_s1 + $0x40c] sm:$0xf]  ;;  %v3761_v29 = vld [vmem:[%s6498_s3 + $0x50] sm:$0xf] }
  0xe9   :  { %1963 = vmatmul.bf16.vlgmr.msra.gmra.mxu3 %v4689_v6  ;;  %1969 = vmatpush.bf16.msrb.mxu0 %v3318_v49  ;;  %v4216_v6 = vld [vmem:[%s6495_s1 + $0x58c] sm:$0xf]  ;;  %v5961_v31 = vpop.f32.mrf.mxu2  ;;  %v1719_v43 = vpop.f32.mrf.mxu0  ;;  %v3510_v46 = vor.u32 %v4240_v34, %v3507_v35  ;;  %v4306_v30 = vld [vmem:[%s6498_s3 + $0x54] sm:$0xf0]  ;;  %v3817_v34 = vld [vmem:[%s6498_s3 + $0xc0] sm:$0xf] }
  0xea   :  { %v3414_v10 = vor.u32 %v4216_v6, %v3411_v21  ;;  %v4204_v49 = vld [vmem:[%s6495_s1 + $0x52c] sm:$0xf] }
  0xeb   :  { %1982 = vmatpush.bf16.msrb.mxu1 %v3446_v50  ;;  %1995 = vmatpush.bf16.msrb.mxu2 %v3574_v51  ;;  %v1732_v50 = vpop.f32.mrf.mxu1  ;;  %v3638_v51 = vor.u32 %v4272_v37, %v3635_v39  ;;  %v3366_v4 = vor.u32 %v4204_v49, %v3363_v53  ;;  %v4232_v6 = vld [vmem:[%s6495_s1 + $0x60c] sm:$0xf]  ;;  %v3905_v37 = vld [vmem:[%s6498_s3 + $0x170] sm:$0xf]  ;;  %v4342_v39 = vld [vmem:[%s6498_s3 + $0x174] sm:$0xf0] }
  0xec   :  { %2008 = vmatpush.bf16.msrb.mxu3 %v3702_v56  ;;  %v5972_v36 = vpop.f32.mrf.mxu3  ;;  %v4268_v56 = vld [vmem:[%s6495_s1 + $0x72c] sm:$0xf]  ;;  %v3906_v48 = vor.u32 %v4342_v39, %v3905_v37  ;;  %v3809_v49 = vld [vmem:[%s6498_s3 + $0xb0] sm:$0xf]  ;;  %v4318_v50 = vld [vmem:[%s6498_s3 + $0xb4] sm:$0xf0] }
  0xed   :  { %1970 = vmatpush.bf16.msrb.mxu0 %v3302_v61  ;;  %v3494_v61 = vor.u32 %v4236_v54, %v3491_v55  ;;  %v3622_v1 = vor.u32 %v4268_v56, %v3619_v57  ;;  %v4264_v21 = vld [vmem:[%s6495_s1 + $0x70c] sm:$0xf]  ;;  %v3897_v54 = vld [vmem:[%s6498_s3 + $0x160] sm:$0xf]  ;;  %v4340_v55 = vld [vmem:[%s6498_s3 + $0x164] sm:$0xf0]  ;;  %v3810_v56 = vor.u32 %v4318_v50, %v3809_v49 }
  0xee   :  { %v3606_v14 = vor.u32 %v4264_v21, %v3603_v3  ;;  %v4298_v3 = vld [vmem:[%s6498_s3 + $0x14] sm:$0xf0]  ;;  %v4323_v37 = vld [vmem:[%s6498_s3 + $0xe4] sm:$0xf] }
  0xef   :  { %1983 = vmatpush.bf16.msrb.mxu1 %v3430_v62  ;;  %1996 = vmatpush.bf16.msrb.mxu2 %v3558_v63  ;;  %v3219_v62 = vld [vmem:[%s6495_s1 + $0x418] sm:$0xf0]  ;;  %v4200_v63 = vld [vmem:[%s6495_s1 + $0x50c] sm:$0xf]  ;;  %v4330_v49 = vld [vmem:[%s6498_s3 + $0x114] sm:$0xf0] }
  0xf0   :  { %2009 = vmatpush.bf16.msrb.mxu3 %v3686_v20  ;;  %v3475_v20 = vld [vmem:[%s6495_s1 + $0x618] sm:$0xf0]  ;;  %v3350_v9 = vor.u32 %v4200_v63, %v3347_v22 }
  0xf1   :  { %1971 = vmatpush.bf16.msrb.mxu0 %v3286_v8  ;;  %v1745_v0 = vpop.f32.mrf.mxu2  ;;  %v4310_v8 = vld [vmem:[%s6498_s3 + $0x74] sm:$0xf0]  ;;  %v3478_v13 = vor.u32 %v4232_v6, %v3475_v20  ;;  %v3889_v6 = vld [vmem:[%s6498_s3 + $0x150] sm:$0xf] }
  0xf2   :  { %v4338_v20 = vld [vmem:[%s6498_s3 + $0x154] sm:$0xf0] }
  0xf3   :  { %1984 = vmatpush.bf16.msrb.mxu1 %v3414_v10  ;;  %1997 = vmatpush.bf16.msrb.mxu2 %v3542_v11  ;;  %v3222_v10 = vor.u32 %v4168_v60, %v3219_v62  ;;  %v3841_v11 = vld [vmem:[%s6498_s3 + $0xf0] sm:$0xf]  ;;  %v3898_v60 = vor.u32 %v4340_v55, %v3897_v54  ;;  %v4316_v62 = vld [vmem:[%s6498_s3 + $0xa4] sm:$0xf0]  ;;  %v4321_v54 = vld [vmem:[%s6498_s3 + $0xd4] sm:$0xf] }
  0xf4   :  { %2010 = vmatpush.bf16.msrb.mxu3 %v3670_v17  ;;  %v1758_v2 = vpop.f32.mrf.mxu3  ;;  %v3778_v17 = vor.u32 %v4310_v8, %v3777_v7  ;;  %v3842_v18 = vor.u32 %v4326_v12, %v3841_v11  ;;  %v3890_v7 = vor.u32 %v4338_v20, %v3889_v6  ;;  %v3793_v8 = vld [vmem:[%s6498_s3 + $0x90] sm:$0xf]  ;;  %v2020_v11 = vmul.f32 0.2, %v5774_v52  ;;  %v3827_v55 = vld [vmem:[%s6498_s3 + $0xd8] sm:$0xf0] }
  0xf5   :  { %1972 = vmatpush.bf16.msrb.mxu0 %v3270_v26  ;;  %v4324_v26 = vld [vmem:[%s6498_s3 + $0xe4] sm:$0xf0]  ;;  %v3729_v2 = vld [vmem:[%s6498_s3 + $0x10] sm:$0xf]  ;;  %v3907_v6 = vld [vmem:[%s6498_s3 + $0x178] sm:$0xf0] }
  0xf7   :  { %1985 = vmatpush.bf16.msrb.mxu1 %v3398_v27  ;;  %1998 = vmatpush.bf16.msrb.mxu2 %v3526_v28  ;;  %v1744_v27 = vadd.f32 %v5961_v31, %v1731_v19  ;;  %v3834_v28 = vor.u32 %v4324_v26, %v3833_v25  ;;  %v3762_v31 = vor.u32 %v4306_v30, %v3761_v29  ;;  %v4296_v19 = vld [vmem:[%s6498_s3 + $0x4] sm:$0xf0]  ;;  %v4325_v29 = vld [vmem:[%s6498_s3 + $0xf4] sm:$0xf]  ;;  %v3843_v30 = vld [vmem:[%s6498_s3 + $0xf8] sm:$0xf0] }
  0xf8   :  { %2011 = vmatpush.bf16.msrb.mxu3 %v3654_v32  ;;  %v4312_v26 = vld [vmem:[%s6498_s3 + $0x84] sm:$0xf0] }
  0xf9   :  { %1973 = vmatpush.bf16.msrb.mxu0 %v3254_v40  ;;  %v1757_v32 = vadd.f32 %v5972_v36, %v1744_v27  ;;  %v3779_v27 = vld [vmem:[%s6498_s3 + $0x78] sm:$0xf0] }
  0xfb   :  { %1986 = vmatpush.bf16.msrb.mxu1 %v3382_v45  ;;  %1999 = vmatpush.bf16.msrb.mxu2 %v3510_v46  ;;  %v3745_v45 = vld [vmem:[%s6498_s3 + $0x30] sm:$0xf]  ;;  %v4302_v46 = vld [vmem:[%s6498_s3 + $0x34] sm:$0xf0] }
  0xfc   :  { %2012 = vmatpush.bf16.msrb.mxu3 %v3638_v51  ;;  %v3746_v53 = vor.u32 %v4302_v46, %v3745_v45 }
  0xfd   :  { %1974 = vmatpush.bf16.msrb.mxu0 %v3238_v59  ;;  %v4300_v59 = vld [vmem:[%s6498_s3 + $0x24] sm:$0xf0] }
  0xfe   :  { %v3738_v22 = vor.u32 %v4300_v59, %v3737_v58  ;;  %v4328_v58 = vld [vmem:[%s6498_s3 + $0x104] sm:$0xf0] }
  0xff   :  { %1987 = vmatpush.bf16.msrb.mxu1 %v3366_v4  ;;  %2000 = vmatpush.bf16.msrb.mxu2 %v3494_v61  ;;  %v3801_v61 = vld [vmem:[%s6498_s3 + $0xa0] sm:$0xf] }
 0x100   :  { %2013 = vmatpush.bf16.msrb.mxu3 %v3622_v1  ;;  %v3802_v21 = vor.u32 %v4316_v62, %v3801_v61  ;;  %v3755_v61 = vld [vmem:[%s6498_s3 + $0x48] sm:$0xf0]  ;;  %v4319_v62 = vld [vmem:[%s6498_s3 + $0xc4] sm:$0xf] }
 0x101   :  { %1975 = vmatpush.bf16.msrb.mxu0 %v3222_v10  ;;  %v1769_v36 = vpop.f32.mrf.mxu0  ;;  %v4314_v10 = vld [vmem:[%s6498_s3 + $0x94] sm:$0xf0] }
 0x102   :  { %v1770_v43 = vadd.f32 %v1769_v36, %v1757_v32  ;;  %v4334_v32 = vld [vmem:[%s6498_s3 + $0x134] sm:$0xf0]  ;;  %v3771_v36 = vld [vmem:[%s6498_s3 + $0x68] sm:$0xf0] }
 0x103   :  { %1988 = vmatpush.bf16.msrb.mxu1 %v3350_v9  ;;  %2001 = vmatpush.bf16.msrb.mxu2 %v3478_v13  ;;  %v1782_v47 = vpop.f32.mrf.mxu1  ;;  %v3730_v9 = vor.u32 %v4298_v3, %v3729_v2  ;;  %v3881_v13 = vld [vmem:[%s6498_s3 + $0x140] sm:$0xf]  ;;  %v3747_v2 = vld [vmem:[%s6498_s3 + $0x38] sm:$0xf0] }
 0x104   :  { %2014 = vmatpush.bf16.msrb.mxu3 %v3606_v14  ;;  %1976 = vmatmul.bf16.vlgmr.msrb.gmra.mxu0 %v4875_v41  ;;  %v4322_v41 = vld [vmem:[%s6498_s3 + $0xd4] sm:$0xf0]  ;;  %v1783_v51 = vadd.f32 %v1782_v47, %v1770_v43  ;;  %v4336_v14 = vld [vmem:[%s6498_s3 + $0x144] sm:$0xf0] }
 0x105   :  { %2422 = vmatpush.bf16.msra.mxu0 %v3778_v17  ;;  %v3826_v33 = vor.u32 %v4322_v41, %v3825_v15  ;;  %v3794_v17 = vor.u32 %v4314_v10, %v3793_v8  ;;  %v3882_v25 = vor.u32 %v4336_v14, %v3881_v13  ;;  %v4332_v43 = vld [vmem:[%s6498_s3 + $0x124] sm:$0xf0]  ;;  %v3811_v8 = vld [vmem:[%s6498_s3 + $0xb8] sm:$0xf0]  ;;  %v4299_v14 = vld [vmem:[%s6498_s3 + $0x24] sm:$0xf] }
 0x106   :  { %1989 = vmatmul.bf16.vlgmr.msrb.gmra.mxu1 %v4879_v44  ;;  %2002 = vmatmul.bf16.vlgmr.msrb.gmra.mxu2 %v4867_v38  ;;  %v3753_v38 = vld [vmem:[%s6498_s3 + $0x40] sm:$0xf]  ;;  %v4304_v44 = vld [vmem:[%s6498_s3 + $0x44] sm:$0xf0] }
 0x107   :  { %2435 = vmatpush.bf16.msra.mxu1 %v3842_v18  ;;  %2015 = vmatmul.bf16.vlgmr.msrb.gmra.mxu3 %v4877_v42  ;;  %v4320_v42 = vld [vmem:[%s6498_s3 + $0xc4] sm:$0xf0]  ;;  %v3754_v35 = vor.u32 %v4304_v44, %v3753_v38  ;;  %v3721_v18 = vld [vmem:[%s6498_s3] sm:$0xf]  ;;  %v3786_v38 = vor.u32 %v4312_v26, %v3785_v23  ;;  %v3803_v23 = vld [vmem:[%s6498_s3 + $0xa8] sm:$0xf0] }
 0x108   :  { %v3818_v40 = vor.u32 %v4320_v42, %v3817_v34  ;;  %2448 = vmatpush.bf16.msra.mxu2 %v3906_v48  ;;  %v3722_v41 = vor.u32 %v4296_v19, %v3721_v18  ;;  %v3846_v42 = vor.u32 %v4325_v29, %v3843_v30  ;;  %v3857_v48 = vld [vmem:[%s6498_s3 + $0x110] sm:$0xf]  ;;  %v4315_v19 = vld [vmem:[%s6498_s3 + $0xa4] sm:$0xf]  ;;  %v4297_v29 = vld [vmem:[%s6498_s3 + $0x14] sm:$0xf] }
 0x109   :  { %2423 = vmatpush.bf16.msra.mxu0 %v3770_v16  ;;  %v1795_v57 = vpop.f32.mrf.mxu2  ;;  %v1771_v1 = vpop.f32.mrf.mxu0  ;;  %v4309_v16 = vld [vmem:[%s6498_s3 + $0x74] sm:$0xf]  ;;  %v3731_v30 = vld [vmem:[%s6498_s3 + $0x18] sm:$0xf0] }
 0x10a   :  { %v1796_v4 = vadd.f32 %v1795_v57, %v1783_v51  ;;  %v3782_v44 = vor.u32 %v4309_v16, %v3779_v27  ;;  %v4305_v51 = vld [vmem:[%s6498_s3 + $0x54] sm:$0xf]  ;;  %v3849_v57 = vld [vmem:[%s6498_s3 + $0x100] sm:$0xf]  ;;  %v3891_v27 = vld [vmem:[%s6498_s3 + $0x158] sm:$0xf0] }
 0x10b   :  { %2436 = vmatpush.bf16.msra.mxu1 %v3834_v28  ;;  %v1784_v5 = vpop.f32.mrf.mxu1  ;;  %v4341_v1 = vld [vmem:[%s6498_s3 + $0x174] sm:$0xf] }
 0x10c   :  { %v1808_v63 = vpop.f32.mrf.mxu3  ;;  %2449 = vmatpush.bf16.msra.mxu2 %v3898_v60  ;;  %v3830_v60 = vor.u32 %v4321_v54, %v3827_v55  ;;  %v3910_v5 = vor.u32 %v4341_v1, %v3907_v6  ;;  %v4337_v16 = vld [vmem:[%s6498_s3 + $0x154] sm:$0xf]  ;;  %v4331_v55 = vld [vmem:[%s6498_s3 + $0x124] sm:$0xf]  ;;  %v3851_v6 = vld [vmem:[%s6498_s3 + $0x108] sm:$0xf0] }
 0x10d   :  { %2424 = vmatpush.bf16.msra.mxu0 %v3762_v31  ;;  %v1809_v0 = vadd.f32 %v1808_v63, %v1796_v4  ;;  %v3873_v31 = vld [vmem:[%s6498_s3 + $0x130] sm:$0xf]  ;;  %v4303_v4 = vld [vmem:[%s6498_s3 + $0x44] sm:$0xf]  ;;  %v3819_v63 = vld [vmem:[%s6498_s3 + $0xc8] sm:$0xf0] }
 0x10e   :  { %v3874_v34 = vor.u32 %v4334_v32, %v3873_v31  ;;  %v3822_v20 = vor.u32 %v4319_v62, %v3819_v63  ;;  %v4313_v31 = vld [vmem:[%s6498_s3 + $0x94] sm:$0xf]  ;;  %v3795_v32 = vld [vmem:[%s6498_s3 + $0x98] sm:$0xf0]  ;;  %v4327_v1 = vld [vmem:[%s6498_s3 + $0x104] sm:$0xf] }
 0x10f   :  { %2437 = vmatpush.bf16.msra.mxu1 %v3826_v33  ;;  %v2021_v12 = vmul.f32 0.2, %v1809_v0  ;;  %v2024_v33 = vmax.f32 %v5774_v52, %v2020_v11  ;;  %v3835_v52 = vld [vmem:[%s6498_s3 + $0xe8] sm:$0xf0]  ;;  %v4329_v62 = vld [vmem:[%s6498_s3 + $0x114] sm:$0xf] }
 0x110   :  { %2450 = vmatpush.bf16.msra.mxu2 %v3890_v7  ;;  %v3838_v50 = vor.u32 %v4323_v37, %v3835_v52  ;;  %v4317_v7 = vld [vmem:[%s6498_s3 + $0xb4] sm:$0xf]  ;;  %v4295_v37 = vld [vmem:[%s6498_s3 + $0x4] sm:$0xf]  ;;  %v3723_v52 = vld [vmem:[%s6498_s3 + $0x8] sm:$0xf0] }
 0x111   :  { %2425 = vmatpush.bf16.msra.mxu0 %v3754_v35  ;;  %v1797_v24 = vpop.f32.mrf.mxu2  ;;  %v2025_v15 = vmax.f32 %v1809_v0, %v2021_v12  ;;  %v4307_v35 = vld [vmem:[%s6498_s3 + $0x64] sm:$0xf]  ;;  %v6197_v45 = vpack.c.bf16 %v2024_v33, %v2024_v33  ;;  %v3758_v0 = vor.u32 %v4303_v4, %v3755_v61  ;;  %v3814_v13 = vor.u32 %v4317_v7, %v3811_v8  ;;  %v3859_v63 = vld [vmem:[%s6498_s3 + $0x118] sm:$0xf0]  ;;  %v3953_v8 = vld [vmem:[%s6498_s3 + $0x1d0] sm:$0xf] }
 0x112   :  { %v3774_v46 = vor.u32 %v4307_v35, %v3771_v36  ;;  %v4339_v12 = vld [vmem:[%s6498_s3 + $0x164] sm:$0xf]  ;;  %v3883_v35 = vld [vmem:[%s6498_s3 + $0x148] sm:$0xf0]  ;;  %v3798_v36 = vor.u32 %v4313_v31, %v3795_v32 }
 0x113   :  { %2438 = vmatpush.bf16.msra.mxu1 %v3818_v40  ;;  %v6189_v39 = vpack.c.bf16 %v2025_v15, %v2025_v15  ;;  %v3865_v40 = vld [vmem:[%s6498_s3 + $0x120] sm:$0xf] }
 0x114   :  { %v1810_v28 = vpop.f32.mrf.mxu3  ;;  %2451 = vmatpush.bf16.msra.mxu2 %v3882_v25  ;;  %v3866_v47 = vor.u32 %v4332_v43, %v3865_v40  ;;  %v4311_v43 = vld [vmem:[%s6498_s3 + $0x84] sm:$0xf] }
 0x115   :  { %2426 = vmatpush.bf16.msra.mxu0 %v3746_v53  ;;  %v3763_v53 = vld [vmem:[%s6498_s3 + $0x58] sm:$0xf0]  ;;  %v3806_v28 = vor.u32 %v4315_v19, %v3803_v23 }
 0x116   :  { %v3766_v59 = vor.u32 %v4305_v51, %v3763_v53  ;;  %v3726_v53 = vor.u32 %v4295_v37, %v3723_v52  ;;  %v4357_v52 = vld [vmem:[%s6498_s3 + $0x1f4] sm:$0xf] }
 0x117   :  { %2439 = vmatpush.bf16.msra.mxu1 %v3810_v56  ;;  %v3858_v56 = vor.u32 %v4330_v49, %v3857_v48  ;;  %v4333_v49 = vld [vmem:[%s6498_s3 + $0x134] sm:$0xf] }
 0x118   :  { %2452 = vmatpush.bf16.msra.mxu2 %v3874_v34 }
 0x119   :  { %2427 = vmatpush.bf16.msra.mxu0 %v3738_v22  ;;  %v3850_v22 = vor.u32 %v4328_v58, %v3849_v57  ;;  %v3969_v58 = vld [vmem:[%s6498_s3 + $0x1f0] sm:$0xf] }
 0x11b   :  { %2440 = vmatpush.bf16.msra.mxu1 %v3802_v21  ;;  %v4301_v21 = vld [vmem:[%s6498_s3 + $0x34] sm:$0xf] }
 0x11c   :  { %2453 = vmatpush.bf16.msra.mxu2 %v3866_v47  ;;  %v3750_v11 = vor.u32 %v4301_v21, %v3747_v2 }
 0x11d   :  { %2428 = vmatpush.bf16.msra.mxu0 %v3730_v9  ;;  %v3899_v9 = vld [vmem:[%s6498_s3 + $0x168] sm:$0xf0] }
 0x11e   :  { %v3902_v18 = vor.u32 %v4339_v12, %v3899_v9 }
 0x11f   :  { %2441 = vmatpush.bf16.msra.mxu1 %v3794_v17  ;;  %v3739_v17 = vld [vmem:[%s6498_s3 + $0x28] sm:$0xf0] }
 0x120   :  { %2454 = vmatpush.bf16.msra.mxu2 %v3858_v56  ;;  %v3742_v26 = vor.u32 %v4299_v14, %v3739_v17  ;;  %v3867_v56 = vld [vmem:[%s6498_s3 + $0x128] sm:$0xf0]  ;;  %v3945_v17 = vld [vmem:[%s6498_s3 + $0x1c0] sm:$0xf] }
 0x121   :  { %2429 = vmatpush.bf16.msra.mxu0 %v3722_v41  ;;  %v1821_v3 = vpop.f32.mrf.mxu0  ;;  %v3894_v41 = vor.u32 %v4337_v16, %v3891_v27 }
 0x123   :  { %2442 = vmatpush.bf16.msra.mxu1 %v3786_v38  ;;  %v1834_v10 = vpop.f32.mrf.mxu1  ;;  %v3734_v38 = vor.u32 %v4297_v29, %v3731_v30  ;;  %v3929_v30 = vld [vmem:[%s6498_s3 + $0x1a0] sm:$0xf] }
 0x124   :  { %2430 = vmatmul.bf16.vlgmr.msra.gmra.mxu0 %v6197_v45  ;;  %2455 = vmatpush.bf16.msra.mxu2 %v3850_v22  ;;  %v3862_v22 = vor.u32 %v4329_v62, %v3859_v63  ;;  %v4349_v63 = vld [vmem:[%s6498_s3 + $0x1b4] sm:$0xf] }
 0x125   :  { %2474 = vmatpush.bf16.msrb.mxu0 %v3782_v44  ;;  %v6294_v44 = vld [vmem:[%s6497_s2] sm:$0xf] }
 0x126   :  { %2443 = vmatmul.bf16.vlgmr.msra.gmra.mxu1 %v6189_v39  ;;  %v290_v34 = vperm.slane %v6294_v44, 2 }
 0x127   :  { %2487 = vmatpush.bf16.msrb.mxu1 %v3846_v42  ;;  %v4335_v42 = vld [vmem:[%s6498_s3 + $0x144] sm:$0xf] }
 0x128   :  { %2500 = vmatpush.bf16.msrb.mxu2 %v3910_v5  ;;  %v3886_v40 = vor.u32 %v4335_v42, %v3883_v35  ;;  %v1822_v51 = vadd.f32 %v1821_v3, %v290_v34  ;;  %v4346_v34 = vld [vmem:[%s6498_s3 + $0x194] sm:$0xf0]  ;;  %v3913_v35 = vld [vmem:[%s6498_s3 + $0x180] sm:$0xf] }
 0x129   :  { %2475 = vmatpush.bf16.msrb.mxu0 %v3774_v46  ;;  %v1847_v24 = vpop.f32.mrf.mxu2  ;;  %v1823_v15 = vpop.f32.mrf.mxu0  ;;  %v3787_v46 = vld [vmem:[%s6498_s3 + $0x88] sm:$0xf0] }
 0x12a   :  { %v3790_v57 = vor.u32 %v4311_v43, %v3787_v46  ;;  %v1835_v61 = vadd.f32 %v1834_v10, %v1822_v51  ;;  %v4354_v10 = vld [vmem:[%s6498_s3 + $0x1d4] sm:$0xf0]  ;;  %v4348_v15 = vld [vmem:[%s6498_s3 + $0x1a4] sm:$0xf0] }
 0x12b   :  { %2488 = vmatpush.bf16.msrb.mxu1 %v3838_v50  ;;  %v1836_v33 = vpop.f32.mrf.mxu1  ;;  %v3875_v50 = vld [vmem:[%s6498_s3 + $0x138] sm:$0xf0]  ;;  %v3954_v12 = vor.u32 %v4354_v10, %v3953_v8  ;;  %v3915_v8 = vld [vmem:[%s6498_s3 + $0x188] sm:$0xf0] }
 0x12c   :  { %v1860_v25 = vpop.f32.mrf.mxu3  ;;  %2501 = vmatpush.bf16.msrb.mxu2 %v3902_v18  ;;  %v3878_v54 = vor.u32 %v4333_v49, %v3875_v50  ;;  %v4352_v18 = vld [vmem:[%s6498_s3 + $0x1c4] sm:$0xf0]  ;;  %v3930_v33 = vor.u32 %v4348_v15, %v3929_v30  ;;  %v3963_v49 = vld [vmem:[%s6498_s3 + $0x1e8] sm:$0xf0]  ;;  %v2096_v30 = vld [vmem:[%s6499_s4] sm:$0x3] }
 0x12d   :  { %2476 = vmatpush.bf16.msrb.mxu0 %v3766_v59  ;;  %v4358_v59 = vld [vmem:[%s6498_s3 + $0x1f4] sm:$0xf0]  ;;  %v3946_v19 = vor.u32 %v4352_v18, %v3945_v17  ;;  %v2098_v15 = vperm.slane %v2096_v30, 0 }
 0x12e   :  { %v3970_v4 = vor.u32 %v4358_v59, %v3969_v58  ;;  %v4351_v59 = vld [vmem:[%s6498_s3 + $0x1c4] sm:$0xf] }
 0x12f   :  { %2489 = vmatpush.bf16.msrb.mxu1 %v3830_v60  ;;  %v3870_v60 = vor.u32 %v4331_v55, %v3867_v56 }
 0x130   :  { %2502 = vmatpush.bf16.msrb.mxu2 %v3894_v41  ;;  %2461 = vmatpush.bf16.msra.mxu3 %v3970_v4 }
 0x131   :  { %2477 = vmatpush.bf16.msrb.mxu0 %v3758_v0  ;;  %v1849_v47 = vpop.f32.mrf.mxu2  ;;  %v1848_v0 = vadd.f32 %v1847_v24, %v1835_v61  ;;  %v291_v61 = vperm.slane %v6294_v44, 3  ;;  %v3931_v44 = vld [vmem:[%s6498_s3 + $0x1a8] sm:$0xf0] }
 0x133   :  { %2490 = vmatpush.bf16.msrb.mxu1 %v3822_v20  ;;  %v3854_v20 = vor.u32 %v4327_v1, %v3851_v6  ;;  %v1861_v21 = vadd.f32 %v1860_v25, %v1848_v0  ;;  %v3937_v25 = vld [vmem:[%s6498_s3 + $0x1b0] sm:$0xf]  ;;  %v4347_v6 = vld [vmem:[%s6498_s3 + $0x1a4] sm:$0xf] }
 0x134   :  { %v1862_v48 = vpop.f32.mrf.mxu3  ;;  %2503 = vmatpush.bf16.msrb.mxu2 %v3886_v40  ;;  %v3971_v40 = vld [vmem:[%s6498_s3 + $0x1f8] sm:$0xf0] }
 0x135   :  { %2478 = vmatpush.bf16.msrb.mxu0 %v3750_v11  ;;  %v3974_v43 = vor.u32 %v4357_v52, %v3971_v40  ;;  %v4355_v48 = vld [vmem:[%s6498_s3 + $0x1e4] sm:$0xf] }
 0x136   :  { %v3966_v50 = vor.u32 %v4355_v48, %v3963_v49  ;;  %v4365_v48 = vld [vmem:[%s6501_s5 + $0x30] sm:$0xff] }
 0x137   :  { %2491 = vmatpush.bf16.msrb.mxu1 %v3814_v13  ;;  %v4373_v49 = vld [vmem:[%s6501_s5 + $0x70] sm:$0xff] }
 0x138   :  { %2504 = vmatpush.bf16.msrb.mxu2 %v3878_v54  ;;  %v3955_v54 = vld [vmem:[%s6498_s3 + $0x1d8] sm:$0xf0] }
 0x139   :  { %2479 = vmatpush.bf16.msrb.mxu0 %v3742_v26  ;;  %v4350_v26 = vld [vmem:[%s6498_s3 + $0x1b4] sm:$0xf0] }
 0x13b   :  { %2492 = vmatpush.bf16.msrb.mxu1 %v3806_v28  ;;  %v3938_v28 = vor.u32 %v4350_v26, %v3937_v25 }
 0x13c   :  { %2505 = vmatpush.bf16.msrb.mxu2 %v3870_v60  ;;  %v3947_v60 = vld [vmem:[%s6498_s3 + $0x1c8] sm:$0xf0] }
 0x13d   :  { %2480 = vmatpush.bf16.msrb.mxu0 %v3734_v38  ;;  %v3921_v38 = vld [vmem:[%s6498_s3 + $0x190] sm:$0xf]  ;;  %v3950_v4 = vor.u32 %v4351_v59, %v3947_v60  ;;  %v4360_v59 = vld [vmem:[%s6501_s5 + $0x8] sm:$0xff] }
 0x13e   :  { %v3922_v42 = vor.u32 %v4346_v34, %v3921_v38  ;;  %v4372_v60 = vld [vmem:[%s6501_s5 + $0x68] sm:$0xff] }
 0x13f   :  { %2493 = vmatpush.bf16.msrb.mxu1 %v3798_v36  ;;  %v4344_v36 = vld [vmem:[%s6498_s3 + $0x184] sm:$0xf0] }
 0x140   :  { %2506 = vmatpush.bf16.msrb.mxu2 %v3862_v22  ;;  %v3914_v37 = vor.u32 %v4344_v36, %v3913_v35  ;;  %v3939_v22 = vld [vmem:[%s6498_s3 + $0x1b8] sm:$0xf0] }
 0x141   :  { %2481 = vmatpush.bf16.msrb.mxu0 %v3726_v53  ;;  %v1873_v2 = vpop.f32.mrf.mxu0  ;;  %v4353_v53 = vld [vmem:[%s6498_s3 + $0x1d4] sm:$0xf]  ;;  %v3942_v1 = vor.u32 %v4349_v63, %v3939_v22  ;;  %v4368_v22 = vld [vmem:[%s6501_s5 + $0x48] sm:$0xff] }
 0x142   :  { %v1874_v3 = vadd.f32 %v1873_v2, %v1861_v21  ;;  %v3958_v56 = vor.u32 %v4353_v53, %v3955_v54  ;;  %v3934_v21 = vor.u32 %v4347_v6, %v3931_v44  ;;  %v4345_v2 = vld [vmem:[%s6498_s3 + $0x194] sm:$0xf]  ;;  %v4363_v53 = vld [vmem:[%s6501_s5 + $0x20] sm:$0xff]  ;;  %v4362_v54 = vld [vmem:[%s6501_s5 + $0x18] sm:$0xff] }
 0x143   :  { %2494 = vmatpush.bf16.msrb.mxu1 %v3790_v57  ;;  %v1886_v5 = vpop.f32.mrf.mxu1  ;;  %v4369_v63 = vld [vmem:[%s6501_s5 + $0x50] sm:$0xff] }
 0x144   :  { %2482 = vmatmul.bf16.vlgmr.msrb.gmra.mxu0 %v6197_v45  ;;  %2507 = vmatpush.bf16.msrb.mxu2 %v3854_v20  ;;  %v3961_v45 = vld [vmem:[%s6498_s3 + $0x1e0] sm:$0xf]  ;;  %v1887_v11 = vadd.f32 %v1886_v5, %v1874_v3 }
 0x146   :  { %2495 = vmatmul.bf16.vlgmr.msrb.gmra.mxu1 %v6189_v39  ;;  %v4356_v39 = vld [vmem:[%s6498_s3 + $0x1e4] sm:$0xf0] }
 0x147   :  { %v3962_v7 = vor.u32 %v4356_v39, %v3961_v45  ;;  %v3923_v45 = vld [vmem:[%s6498_s3 + $0x198] sm:$0xf0] }
 0x148   :  { %v3926_v3 = vor.u32 %v4345_v2, %v3923_v45 }
 0x149   :  { %2462 = vmatpush.bf16.msra.mxu3 %v3962_v7  ;;  %v1899_v9 = vpop.f32.mrf.mxu2  ;;  %v1875_v24 = vpop.f32.mrf.mxu0  ;;  %v4343_v7 = vld [vmem:[%s6498_s3 + $0x184] sm:$0xf] }
 0x14a   :  { %v1900_v13 = vadd.f32 %v1899_v9, %v1887_v11  ;;  %v3918_v10 = vor.u32 %v4343_v7, %v3915_v8 }
 0x14b   :  { %v1888_v16 = vpop.f32.mrf.mxu1 }
 0x14c   :  { %v1912_v14 = vpop.f32.mrf.mxu3 }
 0x14d   :  { %2463 = vmatpush.bf16.msra.mxu3 %v3954_v12  ;;  %v1913_v23 = vadd.f32 %v1912_v14, %v1900_v13 }
 0x14f   :  { %v2022_v27 = vmul.f32 0.2, %v1913_v23 }
 0x151   :  { %2464 = vmatpush.bf16.msra.mxu3 %v3946_v19  ;;  %v2026_v29 = vmax.f32 %v1913_v23, %v2022_v27  ;;  %v1901_v41 = vpop.f32.mrf.mxu2 }
 0x153   :  { %v2030_v31 = vpack.c.bf16 %v2026_v29, %v2026_v29 }
 0x154   :  { %v1914_v32 = vpop.f32.mrf.mxu3 }
 0x155   :  { %2465 = vmatpush.bf16.msra.mxu3 %v3938_v28  ;;  %2456 = vmatmul.bf16.vlgmr.msra.gmra.mxu2 %v2030_v31 }
 0x159   :  { %2466 = vmatpush.bf16.msra.mxu3 %v3930_v33 }
 0x15d   :  { %2467 = vmatpush.bf16.msra.mxu3 %v3922_v42  ;;  %v2099_v42 = vperm.slane %v2096_v30, 1 }
 0x161   :  { %2468 = vmatpush.bf16.msra.mxu3 %v3914_v37  ;;  %v1925_v46 = vpop.f32.mrf.mxu0 }
 0x162   :  { %v1926_v20 = vadd.f32 %v1925_v46, %v291_v61  ;;  %v4366_v46 = vld [vmem:[%s6501_s5 + $0x38] sm:$0xff]  ;;  %v4371_v61 = vld [vmem:[%s6501_s5 + $0x60] sm:$0xff] }
 0x163   :  { %v1938_v47 = vpop.f32.mrf.mxu1  ;;  %2664 = vmatpush.bf16.msra.mxu0 %v4366_v46 }
 0x164   :  { %v1939_v39 = vadd.f32 %v1938_v47, %v1926_v20  ;;  %v4374_v47 = vld [vmem:[%s6501_s5 + $0x78] sm:$0xff] }
 0x165   :  { %2513 = vmatpush.bf16.msrb.mxu3 %v3974_v43  ;;  %2508 = vmatmul.bf16.vlgmr.msrb.gmra.mxu2 %v2030_v31 }
 0x166   :  { %2677 = vmatpush.bf16.msra.mxu1 %v4374_v47 }
 0x167   :  { %2665 = vmatpush.bf16.msra.mxu0 %v4365_v48 }
 0x169   :  { %2514 = vmatpush.bf16.msrb.mxu3 %v3966_v50  ;;  %v1951_v51 = vpop.f32.mrf.mxu2  ;;  %v1927_v57 = vpop.f32.mrf.mxu0  ;;  %v4364_v50 = vld [vmem:[%s6501_s5 + $0x28] sm:$0xff] }
 0x16a   :  { %v1952_v5 = vadd.f32 %v1951_v51, %v1939_v39  ;;  %2678 = vmatpush.bf16.msra.mxu1 %v4373_v49 }
 0x16b   :  { %v1940_v58 = vpop.f32.mrf.mxu1  ;;  %2666 = vmatpush.bf16.msra.mxu0 %v4364_v50 }
 0x16c   :  { %v1964_v55 = vpop.f32.mrf.mxu3 }
 0x16d   :  { %2515 = vmatpush.bf16.msrb.mxu3 %v3958_v56  ;;  %v1965_v11 = vadd.f32 %v1964_v55, %v1952_v5  ;;  %v4361_v56 = vld [vmem:[%s6501_s5 + $0x10] sm:$0xff] }
 0x16e   :  { %2679 = vmatpush.bf16.msra.mxu1 %v4372_v60 }
 0x16f   :  { %2667 = vmatpush.bf16.msra.mxu0 %v4363_v53 }
 0x171   :  { %2516 = vmatpush.bf16.msrb.mxu3 %v3950_v4  ;;  %v1953_v62 = vpop.f32.mrf.mxu2  ;;  %v4359_v4 = vld [vmem:[%s6501_s5] sm:$0xff] }
 0x172   :  { %2680 = vmatpush.bf16.msra.mxu1 %v4371_v61  ;;  %v4370_v62 = vld [vmem:[%s6501_s5 + $0x58] sm:$0xff] }
 0x173   :  { %2668 = vmatpush.bf16.msra.mxu0 %v4362_v54 }
 0x174   :  { %v1966_v0 = vpop.f32.mrf.mxu3 }
 0x175   :  { %2517 = vmatpush.bf16.msrb.mxu3 %v3942_v1  ;;  %v4367_v0 = vld [vmem:[%s6501_s5 + $0x40] sm:$0xff] }
 0x176   :  { %2681 = vmatpush.bf16.msra.mxu1 %v4370_v62 }
 0x177   :  { %2669 = vmatpush.bf16.msra.mxu0 %v4361_v56 }
 0x179   :  { %2518 = vmatpush.bf16.msrb.mxu3 %v3934_v21 }
 0x17a   :  { %2682 = vmatpush.bf16.msra.mxu1 %v4369_v63 }
 0x17b   :  { %2670 = vmatpush.bf16.msra.mxu0 %v4360_v59 }
 0x17d   :  { %2519 = vmatpush.bf16.msrb.mxu3 %v3926_v3 }
 0x17e   :  { %2683 = vmatpush.bf16.msra.mxu1 %v4368_v22 }
 0x17f   :  { %2671 = vmatpush.bf16.msra.mxu0 %v4359_v4 }
 0x181   :  { %v1977_v12 = vpop.f32.mrf.mxu0  ;;  %2520 = vmatpush.bf16.msrb.mxu3 %v3918_v10 }
 0x182   :  { %v1978_v13 = vadd.f32 %v1977_v12, %v1965_v11  ;;  %2684 = vmatpush.bf16.msra.mxu1 %v4367_v0 }
 0x183   :  { %v1990_v9 = vpop.f32.mrf.mxu1 }
 0x184   :  { %v1991_v14 = vadd.f32 %v1990_v9, %v1978_v13  ;;  %v4375_v13 = vld [vmem:[%s6500_s6] ss:$0 sm:$0xff] }
 0x189   :  { %v2003_v17 = vpop.f32.mrf.mxu2  ;;  %v1979_v23 = vpop.f32.mrf.mxu0 }
 0x18a   :  { %v2004_v18 = vadd.f32 %v2003_v17, %v1991_v14  ;;  %v2016_v19 = vpop.f32.mrf.mxu3 }
 0x18b   :  { %v1992_v24 = vpop.f32.mrf.mxu1 }
 0x18c   :  { %v2017_v25 = vadd.f32 %v2016_v19, %v2004_v18 }
 0x18e   :  { %v2023_v26 = vmul.f32 0.2, %v2017_v25 }
 0x190   :  { %v2027_v16 = vmax.f32 %v2017_v25, %v2023_v26 }
 0x191   :  { %v2005_v27 = vpop.f32.mrf.mxu2 }
 0x192   :  { %v2031_v28 = vpack.c.bf16 %v2027_v16, %v2027_v16  ;;  %v2018_v29 = vpop.f32.mrf.mxu3 }
 0x194   :  { %2469 = vmatmul.bf16.vlgmr.msra.gmra.mxu3 %v2031_v28 }
 0x1a1   :  { %v2431_v41 = vpop.f32.mrf.mxu0 }
 0x1a2   :  { %v2432_v31 = vadd.f32 %v2431_v41, %v2098_v15 }
 0x1a3   :  { %v2444_v32 = vpop.f32.mrf.mxu1 }
 0x1a4   :  { %v2445_v33 = vadd.f32 %v2444_v32, %v2432_v31  ;;  %2521 = vmatmul.bf16.vlgmr.msrb.gmra.mxu3 %v2031_v28 }
 0x1a9   :  { %v2433_v38 = vpop.f32.mrf.mxu0 }
 0x1ab   :  { %v2446_v34 = vpop.f32.mrf.mxu1 }
 0x1c1   :  { %v2483_v35 = vpop.f32.mrf.mxu0 }
 0x1c2   :  { %v2484_v36 = vadd.f32 %v2483_v35, %v2099_v42 }
 0x1c3   :  { %v2496_v37 = vpop.f32.mrf.mxu1 }
 0x1c4   :  { %v2497_v52 = vadd.f32 %v2496_v37, %v2484_v36 }
 0x1c9   :  { %v2485_v40 = vpop.f32.mrf.mxu0 }
 0x1cb   :  { %v2498_v43 = vpop.f32.mrf.mxu1 }
 0x1d8   :  { %v2457_v51 = vpop.f32.mrf.mxu2 }
 0x1d9   :  { %v2458_v1 = vadd.f32 %v2457_v51, %v2445_v33 }
 0x1e0   :  { %v2459_v55 = vpop.f32.mrf.mxu2 }
 0x1e8   :  { %v2509_v57 = vpop.f32.mrf.mxu2 }
 0x1e9   :  { %v2510_v39 = vadd.f32 %v2509_v57, %v2497_v52 }
 0x1f0   :  { %v2511_v58 = vpop.f32.mrf.mxu2 }
 0x217   :  { %v2470_v6 = vpop.f32.mrf.mxu3 }
 0x218   :  { %v2471_v44 = vadd.f32 %v2470_v6, %v2458_v1 }
 0x21a   :  { %v2526_v20 = vmul.f32 0.2, %v2471_v44 }
 0x21c   :  { %v2528_v21 = vmax.f32 %v2471_v44, %v2526_v20 }
 0x21e   :  { %v2530_v2 = vpack.c.bf16 %v2528_v21, %v2528_v21 }
 0x21f   :  { %v2472_v45 = vpop.f32.mrf.mxu3 }
 0x220   :  { %2672 = vmatmul.bf16.vlgmr.msra.gmra.mxu0 %v2530_v2 }
 0x227   :  { %v2522_v3 = vpop.f32.mrf.mxu3 }
 0x228   :  { %v2523_v5 = vadd.f32 %v2522_v3, %v2510_v39 }
 0x22a   :  { %v2527_v7 = vmul.f32 0.2, %v2523_v5 }
 0x22c   :  { %v2529_v8 = vmax.f32 %v2523_v5, %v2527_v7 }
 0x22e   :  { %v2531_v10 = vpack.c.bf16 %v2529_v8, %v2529_v8 }
 0x22f   :  { %v2524_v11 = vpop.f32.mrf.mxu3 }
 0x230   :  { %2685 = vmatmul.bf16.vlgmr.msra.gmra.mxu1 %v2531_v10 }
 0x29d   :  { %v2673_v12 = vpop.f32.mrf.mxu0 }
 0x29e   :  { %v2674_v14 = vadd.f32 %v4375_v13, %v2673_v12 }
 0x2a5   :  { %v2675_v9 = vpop.f32.mrf.mxu0 }
 0x2ad   :  { %v2686_v17 = vpop.f32.mrf.mxu1 }
 0x2ae   :  { %v2687_v18 = vadd.f32 %v2686_v17, %v2674_v14 }
 0x2b0   :  { %2690 = vst [vmem:[%s6502_s7] sm:$0xff] %v2687_v18 }
 0x2b5   :  { %v2688_v19 = vpop.f32.mrf.mxu1 }

</bundles_post_ra>
